<compile_context>
chip_gen: v5e
topology: v5e:2x2
jax: 0.10.0
libtpu: 0.0.40
codegen_flags: <defaults>
</compile_context>

<pallas_src>
import functools
import math

import jax
import jax.numpy as jnp
from jax.experimental import pallas as pl
from jax.experimental.pallas import tpu as pltpu

EPS = 1e-5


# ----------------------------- fused kernel -------------------------------- #

def _decoder_layer_kernel(x_ref, cross_ref, w_ref, o_ref, *, n_heads, d_model,
                          d_ff):
    """Fused self-attn -> cross-attn -> FFN (all pre-norm + residual).

    x_ref     : (bb, Lq, D)   batch block of the decoder activations
    cross_ref : (bb, Lkv, D)  batch block of the (raw) cross sequence
    w_ref     : (6*D + d_ff + 8, W) packed weight slab (see pack_params)
    o_ref     : (bb, Lq, D)
    """
    D, H = d_model, n_heads
    dh = D // H

    # ---- static offsets into the packed weight slab (mirror pack_params) ----
    r_qkv_s, r_wo_s, r_wq_c, r_wkv_c, r_wo_c, r_w1 = (i * D for i in range(6))
    r_w2 = 6 * D
    r_b = 6 * D + d_ff

    # Load each weight exactly once (sublane-aligned, lane-offset-0 windows).
    wqkv_s = w_ref[r_qkv_s:r_qkv_s + D, 0:3 * D]     # LN2-folded, scale in Q
    wo_s = w_ref[r_wo_s:r_wo_s + D, 0:D]
    wq_c = w_ref[r_wq_c:r_wq_c + D, 0:D]             # LN4-folded, scale folded
    wkv_c = w_ref[r_wkv_c:r_wkv_c + D, 0:2 * D]      # acts on raw cross
    wo_c = w_ref[r_wo_c:r_wo_c + D, 0:D]
    w1 = w_ref[r_w1:r_w1 + D, 0:d_ff]                # LN5-folded
    w2 = w_ref[r_w2:r_w2 + d_ff, 0:D]

    bqkv_s = w_ref[r_b + 0:r_b + 1, 0:3 * D]
    bq_c = w_ref[r_b + 1:r_b + 2, 0:D]
    bkv_c = w_ref[r_b + 2:r_b + 3, 0:2 * D]
    bo_s = w_ref[r_b + 3:r_b + 4, 0:D]
    bo_c = w_ref[r_b + 4:r_b + 5, 0:D]
    b1 = w_ref[r_b + 5:r_b + 6, 0:d_ff]
    b2 = w_ref[r_b + 6:r_b + 7, 0:D]

    def norm(t):
        # LayerNorm without affine (gamma/beta folded host-side into the
        # downstream projection weights).
        mu = jnp.mean(t, axis=-1, keepdims=True)
        var = jnp.mean(jnp.square(t - mu), axis=-1, keepdims=True)
        return (t - mu) * jax.lax.rsqrt(var + EPS)

    def heads_attn(q_src, q0, k_src, k0, v_src, v0, wo):
        """Per-head softmax attention with the head reduction folded into the
        per-head output-projection matmuls (no (H,Lq,D) stack, no broadcast)."""
        out = None
        for h in range(H):
            lo = h * dh
            q = q_src[:, q0 + lo:q0 + lo + dh]       # (Lq, dh)
            k = k_src[:, k0 + lo:k0 + lo + dh]       # (Lkv, dh)
            v = v_src[:, v0 + lo:v0 + lo + dh]       # (Lkv, dh)
            s = jnp.einsum("qe,ke->qk", q, k,
                           preferred_element_type=jnp.float32)
            s = s - jnp.max(s, axis=-1, keepdims=True)
            p = jnp.exp(s)
            inv = pl.reciprocal(jnp.sum(p, axis=-1, keepdims=True), approx=True)
            o = jnp.dot(p, v, preferred_element_type=jnp.float32) * inv
            part = jnp.dot(o, wo[lo:lo + dh, :],
                           preferred_element_type=jnp.float32)
            out = part if out is None else out + part
        return out

    for b in range(x_ref.shape[0]):                  # static unroll over block
        x = x_ref[b]                                 # (Lq, D)
        cr = cross_ref[b]                            # (Lkv, D)

        # -- global self attention: norm2 -> MHA(xn, xn, xn) -> + residual ----
        qkv = jnp.dot(norm(x), wqkv_s,
                      preferred_element_type=jnp.float32) + bqkv_s
        x = x + heads_attn(qkv, 0, qkv, D, qkv, 2 * D, wo_s) + bo_s

        # -- global cross attention: norm4(q) with raw cross K/V -> + residual
        qc = jnp.dot(norm(x), wq_c,
                     preferred_element_type=jnp.float32) + bq_c
        kv = jnp.dot(cr, wkv_c,
                     preferred_element_type=jnp.float32) + bkv_c
        x = x + heads_attn(qc, 0, kv, 0, kv, D, wo_c) + bo_c

        # -- FFN: norm5 -> conv1(k=1) -> relu -> conv2(k=1) -> + residual ------
        hdn = jnp.maximum(
            jnp.dot(norm(x), w1, preferred_element_type=jnp.float32) + b1, 0.0)
        x = x + jnp.dot(hdn, w2, preferred_element_type=jnp.float32) + b2

        o_ref[b] = x.astype(o_ref.dtype)


# ----------------------------- host-side packing --------------------------- #

def pack_params(params, *, d_model, n_heads, d_ff):
    """Fold LayerNorm affines + score scale into the projections and pack every
    weight/bias into ONE lane-padded (6*D + d_ff + 8, W) slab (single DMA)."""
    D = d_model
    dh = D // n_heads
    scale = 1.0 / math.sqrt(dh)
    W = int(pl.cdiv(max(3 * D, d_ff), 128) * 128)

    sp, cp, fp = params["self_attn"], params["cross_attn"], params["ffn"]

    def ln_fold(w, b, gamma, beta):
        # (x_hat*gamma + beta) @ w + b == x_hat @ (gamma[:,None]*w) + (beta@w + b)
        return gamma[:, None] * w, beta @ w + b

    # -- self attention: LN(norm2) folded into Q/K/V, score scale into Q ------
    g, be = sp["gamma"][0], sp["beta"][0]
    wq, bq = ln_fold(sp["wq"], sp["bq"][0], g, be)
    wk, bk = ln_fold(sp["wk"], sp["bk"][0], g, be)
    wv, bv = ln_fold(sp["wv"], sp["bv"][0], g, be)
    wqkv_s = jnp.concatenate([wq * scale, wk, wv], axis=1)        # (D, 3D)
    bqkv_s = jnp.concatenate([bq * scale, bk, bv], axis=0)        # (3D,)

    # -- cross attention: LN(norm4) folds into Q only; K/V see the raw cross --
    g, be = cp["gamma"][0], cp["beta"][0]
    wq, bq = ln_fold(cp["wq"], cp["bq"][0], g, be)
    wq_c, bq_c = wq * scale, bq * scale                           # (D, D), (D,)
    wkv_c = jnp.concatenate([cp["wk"], cp["wv"]], axis=1)         # (D, 2D)
    bkv_c = jnp.concatenate([cp["bk"][0], cp["bv"][0]], axis=0)   # (2D,)

    # -- FFN: LN(norm5) folded into conv1 (kernel_size=1 -> plain linear) -----
    g, be = fp["gamma"][0], fp["beta"][0]
    w1, b1 = ln_fold(fp["w1"], fp["b1"][0], g, be)
    w2, b2 = fp["w2"], fp["b2"][0]

    def pw(w):    # pad a weight matrix to the slab lane width
        return jnp.pad(w, ((0, 0), (0, W - w.shape[1])))

    def pb(b):    # pad a bias vector to one slab row
        return jnp.pad(b[None, :], ((0, 0), (0, W - b.shape[0])))

    wslab = jnp.concatenate(
        [pw(wqkv_s), pw(sp["wo"]), pw(wq_c), pw(wkv_c), pw(cp["wo"]),
         pw(w1), pw(w2),
         pb(bqkv_s), pb(bq_c), pb(bkv_c), pb(sp["bo"][0]), pb(cp["bo"][0]),
         pb(b1), pb(b2), jnp.zeros((1, W), jnp.float32)],   # pad biases to 8 rows
        axis=0)
    return wslab


# ----------------------------- wrapper ------------------------------------- #

def _default_batch_blocks(batch):
    """One grid step per TensorCore: fold the whole batch into a single step on
    single-TC chips (v5e/v6e), keep a 2-way parallel batch grid otherwise
    (v4/v5p/v7x have 2 TensorCores per chip)."""
    try:
        kind = jax.devices()[0].device_kind.lower()
    except Exception:
        kind = ""
    single_tc = ("lite" in kind) or ("v5e" in kind) or ("v6e" in kind)
    n_tc = 1 if single_tc else 2
    return max(math.gcd(batch, n_tc), 1)


def decoder_layer_forward(x, cross, params, *, n_heads, batch_blocks=None):
    B, Lq, D = x.shape
    Lkv = cross.shape[1]
    d_ff = params["ffn"]["w1"].shape[1]
    assert D % n_heads == 0

    if batch_blocks is None:
        batch_blocks = _default_batch_blocks(B)
    assert B % batch_blocks == 0
    bb = B // batch_blocks

    wslab = pack_params(params, d_model=D, n_heads=n_heads, d_ff=d_ff)

    kernel = functools.partial(_decoder_layer_kernel, n_heads=n_heads,
                               d_model=D, d_ff=d_ff)
    out = pl.pallas_call(
        kernel,
        out_shape=jax.ShapeDtypeStruct((B, Lq, D), x.dtype),
        grid=(batch_blocks,),
        in_specs=[
            pl.BlockSpec((bb, Lq, D), lambda i: (i, 0, 0)),
            pl.BlockSpec((bb, Lkv, D), lambda i: (i, 0, 0)),
            pl.BlockSpec(wslab.shape, lambda i: (0, 0)),
        ],
        out_specs=pl.BlockSpec((bb, Lq, D), lambda i: (i, 0, 0)),
        # NOTE: only saves an HBM copy if the caller donates x at the jit
        # boundary (jax.jit(..., donate_argnums=0)); harmless otherwise.
        input_output_aliases={0: 0},
        compiler_params=pltpu.CompilerParams(
            dimension_semantics=("parallel",)),
    )(x, cross, wslab)
    return out, None   # output_cross_attn=False -> attn is None


# ----------------------------- params / reference --------------------------- #

def init_params(key, d_model, n_heads, d_ff):
    ks = iter(jax.random.split(key, 16))

    def lin(k, din, dout):
        return jax.random.normal(k, (din, dout), jnp.float32) / math.sqrt(din)

    def attn_p():
        return dict(
            gamma=jnp.ones((1, d_model), jnp.float32),
            beta=jnp.zeros((1, d_model), jnp.float32),
            wq=lin(next(ks), d_model, d_model), bq=jnp.zeros((1, d_model), jnp.float32),
            wk=lin(next(ks), d_model, d_model), bk=jnp.zeros((1, d_model), jnp.float32),
            wv=lin(next(ks), d_model, d_model), bv=jnp.zeros((1, d_model), jnp.float32),
            wo=lin(next(ks), d_model, d_model), bo=jnp.zeros((1, d_model), jnp.float32),
        )

    ffn = dict(
        gamma=jnp.ones((1, d_model), jnp.float32),
        beta=jnp.zeros((1, d_model), jnp.float32),
        w1=lin(next(ks), d_model, d_ff), b1=jnp.zeros((1, d_ff), jnp.float32),
        w2=lin(next(ks), d_ff, d_model), b2=jnp.zeros((1, d_model), jnp.float32),
    )
    return dict(self_attn=attn_p(), cross_attn=attn_p(), ffn=ffn)


def ref_forward(x, cross, params, *, n_heads):
    """Pure-JAX reference mirroring the PyTorch forward (eval mode)."""
    def ln(t, p):
        mean = t.mean(-1, keepdims=True)
        var = ((t - mean) ** 2).mean(-1, keepdims=True)
        return (t - mean) / jnp.sqrt(var + EPS) * p["gamma"][0] + p["beta"][0]

    def mha(t, kv, p, self_attn):
        tn = ln(t, p)
        kvn = tn if self_attn else kv
        q = tn @ p["wq"] + p["bq"][0]
        k = kvn @ p["wk"] + p["bk"][0]
        v = kvn @ p["wv"] + p["bv"][0]
        B, Lq, D = q.shape
        Lkv = k.shape[1]
        dh = D // n_heads
        qh = q.reshape(B, Lq, n_heads, dh)
        kh = k.reshape(B, Lkv, n_heads, dh)
        vh = v.reshape(B, Lkv, n_heads, dh)
        s = jnp.einsum("blhe,bshe->bhls", qh, kh) / math.sqrt(dh)
        a = jax.nn.softmax(s, axis=-1)
        o = jnp.einsum("bhls,bshd->blhd", a, vh).reshape(B, Lq, D)
        return t + (o @ p["wo"] + p["bo"][0])

    x = mha(x, x, params["self_attn"], True)
    x = mha(x, cross, params["cross_attn"], False)
    p = params["ffn"]
    xn = ln(x, p)
    h = jax.nn.relu(xn @ p["w1"] + p["b1"][0])
    return x + (h @ p["w2"] + p["b2"][0]), None


# --------------------------------- main ------------------------------------ #

if __name__ == "__main__":
    B = 2
    d_model = 32
    n_heads = 2
    d_ff = 4 * d_model          # module default d_ff = 4 * d_model
    d_yt, d_yc = 3, 5
    tgt_len, ctx_len = 8, 8
    Lq = d_yt * tgt_len         # decoder (target) flattened sequence length
    Lkv = d_yc * ctx_len        # encoder (context) flattened sequence length

    key = jax.random.PRNGKey(0)
    kx, kc, kp = jax.random.split(key, 3)
    x = jax.random.normal(kx, (B, Lq, d_model), jnp.float32)
    cross = jax.random.normal(kc, (B, Lkv, d_model), jnp.float32)
    params = init_params(kp, d_model, n_heads, d_ff)

    # Reference first (defensive w.r.t. the output aliasing of x's buffer).
    ref, _ = ref_forward(x, cross, params, n_heads=n_heads)

    fwd = jax.jit(functools.partial(decoder_layer_forward, n_heads=n_heads))
    out, attn = fwd(x, cross, params)
    out = jax.block_until_ready(out)

    assert out.shape == (B, Lq, d_model)
    assert attn is None
    assert jnp.allclose(out, ref, atol=2e-2, rtol=2e-2), "mismatch vs reference"

    print("KERNEL_OK")
</pallas_src>

<mosaic_0001>
module attributes {stable_mosaic.version = 11 : i64} {
  func.func @_decoder_layer_kernel(%arg0: i32, %arg1: memref<1x24x32xf32, #tpu.memory_space<vmem>>, %arg2: memref<1x40x32xf32, #tpu.memory_space<vmem>>, %arg3: memref<328x128xf32, #tpu.memory_space<vmem>>, %arg4: memref<1x24x32xf32, #tpu.memory_space<vmem>>) attributes {dimension_semantics = [#tpu.dimension_semantics<parallel>], iteration_bounds = array<i64: 2>, scalar_prefetch = 0 : i64, scratch_operands = 0 : i64, tpu.core_type = #tpu.core_type<tc>, window_params = [{transform_indices = @transform_0, window_bounds = array<i64: 1, 24, 32>}, {transform_indices = @transform_1, window_bounds = array<i64: 1, 40, 32>}, {pipeline_mode = #tpu.pipeline_mode<synchronous>, transform_indices = @transform_2, window_bounds = array<i64: 328, 128>}, {transform_indices = @transform_3, window_bounds = array<i64: 1, 24, 32>}]} {
    %c0 = arith.constant 0 : index
    %c0_0 = arith.constant 0 : index
    %0 = vector.load %arg3[%c0, %c0_0] : memref<328x128xf32, #tpu.memory_space<vmem>>, vector<32x96xf32>
    %c32 = arith.constant 32 : index
    %c0_1 = arith.constant 0 : index
    %1 = vector.load %arg3[%c32, %c0_1] : memref<328x128xf32, #tpu.memory_space<vmem>>, vector<32x32xf32>
    %c64 = arith.constant 64 : index
    %c0_2 = arith.constant 0 : index
    %2 = vector.load %arg3[%c64, %c0_2] : memref<328x128xf32, #tpu.memory_space<vmem>>, vector<32x32xf32>
    %c96 = arith.constant 96 : index
    %c0_3 = arith.constant 0 : index
    %3 = vector.load %arg3[%c96, %c0_3] : memref<328x128xf32, #tpu.memory_space<vmem>>, vector<32x64xf32>
    %c128 = arith.constant 128 : index
    %c0_4 = arith.constant 0 : index
    %4 = vector.load %arg3[%c128, %c0_4] : memref<328x128xf32, #tpu.memory_space<vmem>>, vector<32x32xf32>
    %c160 = arith.constant 160 : index
    %c0_5 = arith.constant 0 : index
    %5 = vector.load %arg3[%c160, %c0_5] : memref<328x128xf32, #tpu.memory_space<vmem>>, vector<32x128xf32>
    %c192 = arith.constant 192 : index
    %c0_6 = arith.constant 0 : index
    %6 = vector.load %arg3[%c192, %c0_6] : memref<328x128xf32, #tpu.memory_space<vmem>>, vector<128x32xf32>
    %c320 = arith.constant 320 : index
    %c0_7 = arith.constant 0 : index
    %7 = vector.load %arg3[%c320, %c0_7] : memref<328x128xf32, #tpu.memory_space<vmem>>, vector<1x96xf32>
    %c321 = arith.constant 321 : index
    %c0_8 = arith.constant 0 : index
    %8 = vector.load %arg3[%c321, %c0_8] : memref<328x128xf32, #tpu.memory_space<vmem>>, vector<1x32xf32>
    %c322 = arith.constant 322 : index
    %c0_9 = arith.constant 0 : index
    %9 = vector.load %arg3[%c322, %c0_9] : memref<328x128xf32, #tpu.memory_space<vmem>>, vector<1x64xf32>
    %c323 = arith.constant 323 : index
    %c0_10 = arith.constant 0 : index
    %10 = vector.load %arg3[%c323, %c0_10] : memref<328x128xf32, #tpu.memory_space<vmem>>, vector<1x32xf32>
    %c324 = arith.constant 324 : index
    %c0_11 = arith.constant 0 : index
    %11 = vector.load %arg3[%c324, %c0_11] : memref<328x128xf32, #tpu.memory_space<vmem>>, vector<1x32xf32>
    %c325 = arith.constant 325 : index
    %c0_12 = arith.constant 0 : index
    %12 = vector.load %arg3[%c325, %c0_12] : memref<328x128xf32, #tpu.memory_space<vmem>>, vector<1x128xf32>
    %c326 = arith.constant 326 : index
    %c0_13 = arith.constant 0 : index
    %13 = vector.load %arg3[%c326, %c0_13] : memref<328x128xf32, #tpu.memory_space<vmem>>, vector<1x32xf32>
    %c0_14 = arith.constant 0 : index
    %c0_15 = arith.constant 0 : index
    %c0_16 = arith.constant 0 : index
    %14 = vector.load %arg1[%c0_14, %c0_15, %c0_16] : memref<1x24x32xf32, #tpu.memory_space<vmem>>, vector<1x24x32xf32>
    %15 = vector.shape_cast %14 : vector<1x24x32xf32> to vector<24x32xf32>
    %c0_17 = arith.constant 0 : index
    %c0_18 = arith.constant 0 : index
    %c0_19 = arith.constant 0 : index
    %16 = vector.load %arg2[%c0_17, %c0_18, %c0_19] : memref<1x40x32xf32, #tpu.memory_space<vmem>>, vector<1x40x32xf32>
    %17 = vector.shape_cast %16 : vector<1x40x32xf32> to vector<40x32xf32>
    %cst = arith.constant dense<0.000000e+00> : vector<24xf32>
    %18 = vector.multi_reduction <add>, %15, %cst [1] : vector<24x32xf32> to vector<24xf32>
    %19 = vector.shape_cast %18 : vector<24xf32> to vector<24x1xf32>
    %cst_20 = arith.constant 3.200000e+01 : f32
    %20 = vector.broadcast %cst_20 : f32 to vector<24x1xf32>
    %21 = arith.divf %19, %20 : vector<24x1xf32>
    %22 = vector.broadcast %21 : vector<24x1xf32> to vector<24x32xf32>
    %23 = arith.subf %15, %22 : vector<24x32xf32>
    %24 = arith.mulf %23, %23 : vector<24x32xf32>
    %cst_21 = arith.constant dense<0.000000e+00> : vector<24xf32>
    %25 = vector.multi_reduction <add>, %24, %cst_21 [1] : vector<24x32xf32> to vector<24xf32>
    %26 = vector.shape_cast %25 : vector<24xf32> to vector<24x1xf32>
    %cst_22 = arith.constant 3.200000e+01 : f32
    %27 = vector.broadcast %cst_22 : f32 to vector<24x1xf32>
    %28 = arith.divf %26, %27 : vector<24x1xf32>
    %29 = vector.broadcast %21 : vector<24x1xf32> to vector<24x32xf32>
    %30 = arith.subf %15, %29 : vector<24x32xf32>
    %cst_23 = arith.constant 9.99999974E-6 : f32
    %31 = vector.broadcast %cst_23 : f32 to vector<24x1xf32>
    %32 = arith.addf %28, %31 : vector<24x1xf32>
    %33 = math.rsqrt %32 : vector<24x1xf32>
    %34 = vector.broadcast %33 : vector<24x1xf32> to vector<24x32xf32>
    %35 = arith.mulf %30, %34 : vector<24x32xf32>
    %cst_24 = arith.constant dense<0.000000e+00> : vector<24x96xf32>
    %36 = tpu.matmul %35, %0, %cst_24 {dimension_numbers = #tpu.dot_dimension_numbers<[1], [0], [0], [1], [0, 0, 1, 1], [], []>} : vector<24x32xf32>, vector<32x96xf32>, vector<24x96xf32> -> vector<24x96xf32>
    %37 = vector.broadcast %7 : vector<1x96xf32> to vector<24x96xf32>
    %38 = arith.addf %36, %37 : vector<24x96xf32>
    %39 = vector.extract_strided_slice %38 {offsets = [0, 0], sizes = [24, 16], strides = [1, 1]} : vector<24x96xf32> to vector<24x16xf32>
    %40 = vector.extract_strided_slice %38 {offsets = [0, 32], sizes = [24, 16], strides = [1, 1]} : vector<24x96xf32> to vector<24x16xf32>
    %41 = vector.extract_strided_slice %38 {offsets = [0, 64], sizes = [24, 16], strides = [1, 1]} : vector<24x96xf32> to vector<24x16xf32>
    "tpu.trace_start"() <{level = 10 : i32, message = "qe,ke->qk"}> : () -> ()
    %cst_25 = arith.constant dense<0.000000e+00> : vector<24x24xf32>
    %42 = tpu.matmul %39, %40, %cst_25 {dimension_numbers = #tpu.dot_dimension_numbers<[1], [1], [0], [0], [0, 0, 1, 0], [], []>} : vector<24x16xf32>, vector<24x16xf32>, vector<24x24xf32> -> vector<24x24xf32>
    "tpu.trace_stop"() : () -> ()
    %cst_26 = arith.constant dense<0xFF800000> : vector<24xf32>
    %43 = vector.multi_reduction <maximumf>, %42, %cst_26 [1] : vector<24x24xf32> to vector<24xf32>
    %44 = vector.shape_cast %43 : vector<24xf32> to vector<24x1xf32>
    %45 = vector.broadcast %44 : vector<24x1xf32> to vector<24x24xf32>
    %46 = arith.subf %42, %45 : vector<24x24xf32>
    %47 = math.exp %46 : vector<24x24xf32>
    %cst_27 = arith.constant dense<0.000000e+00> : vector<24xf32>
    %48 = vector.multi_reduction <add>, %47, %cst_27 [1] : vector<24x24xf32> to vector<24xf32>
    %49 = vector.shape_cast %48 : vector<24xf32> to vector<24x1xf32>
    %50 = tpu.reciprocal %49 {approx = true} : vector<24x1xf32> -> vector<24x1xf32>
    %cst_28 = arith.constant dense<0.000000e+00> : vector<24x16xf32>
    %51 = tpu.matmul %47, %41, %cst_28 {dimension_numbers = #tpu.dot_dimension_numbers<[1], [0], [0], [1], [0, 0, 1, 1], [], []>} : vector<24x24xf32>, vector<24x16xf32>, vector<24x16xf32> -> vector<24x16xf32>
    %52 = vector.broadcast %50 : vector<24x1xf32> to vector<24x16xf32>
    %53 = arith.mulf %51, %52 : vector<24x16xf32>
    %54 = vector.extract_strided_slice %1 {offsets = [0, 0], sizes = [16, 32], strides = [1, 1]} : vector<32x32xf32> to vector<16x32xf32>
    %cst_29 = arith.constant dense<0.000000e+00> : vector<24x32xf32>
    %55 = tpu.matmul %53, %54, %cst_29 {dimension_numbers = #tpu.dot_dimension_numbers<[1], [0], [0], [1], [0, 0, 1, 1], [], []>} : vector<24x16xf32>, vector<16x32xf32>, vector<24x32xf32> -> vector<24x32xf32>
    %56 = vector.extract_strided_slice %38 {offsets = [0, 16], sizes = [24, 16], strides = [1, 1]} : vector<24x96xf32> to vector<24x16xf32>
    %57 = vector.extract_strided_slice %38 {offsets = [0, 48], sizes = [24, 16], strides = [1, 1]} : vector<24x96xf32> to vector<24x16xf32>
    %58 = vector.extract_strided_slice %38 {offsets = [0, 80], sizes = [24, 16], strides = [1, 1]} : vector<24x96xf32> to vector<24x16xf32>
    "tpu.trace_start"() <{level = 10 : i32, message = "qe,ke->qk"}> : () -> ()
    %cst_30 = arith.constant dense<0.000000e+00> : vector<24x24xf32>
    %59 = tpu.matmul %56, %57, %cst_30 {dimension_numbers = #tpu.dot_dimension_numbers<[1], [1], [0], [0], [0, 0, 1, 0], [], []>} : vector<24x16xf32>, vector<24x16xf32>, vector<24x24xf32> -> vector<24x24xf32>
    "tpu.trace_stop"() : () -> ()
    %cst_31 = arith.constant dense<0xFF800000> : vector<24xf32>
    %60 = vector.multi_reduction <maximumf>, %59, %cst_31 [1] : vector<24x24xf32> to vector<24xf32>
    %61 = vector.shape_cast %60 : vector<24xf32> to vector<24x1xf32>
    %62 = vector.broadcast %61 : vector<24x1xf32> to vector<24x24xf32>
    %63 = arith.subf %59, %62 : vector<24x24xf32>
    %64 = math.exp %63 : vector<24x24xf32>
    %cst_32 = arith.constant dense<0.000000e+00> : vector<24xf32>
    %65 = vector.multi_reduction <add>, %64, %cst_32 [1] : vector<24x24xf32> to vector<24xf32>
    %66 = vector.shape_cast %65 : vector<24xf32> to vector<24x1xf32>
    %67 = tpu.reciprocal %66 {approx = true} : vector<24x1xf32> -> vector<24x1xf32>
    %cst_33 = arith.constant dense<0.000000e+00> : vector<24x16xf32>
    %68 = tpu.matmul %64, %58, %cst_33 {dimension_numbers = #tpu.dot_dimension_numbers<[1], [0], [0], [1], [0, 0, 1, 1], [], []>} : vector<24x24xf32>, vector<24x16xf32>, vector<24x16xf32> -> vector<24x16xf32>
    %69 = vector.broadcast %67 : vector<24x1xf32> to vector<24x16xf32>
    %70 = arith.mulf %68, %69 : vector<24x16xf32>
    %71 = vector.extract_strided_slice %1 {offsets = [16, 0], sizes = [16, 32], strides = [1, 1]} : vector<32x32xf32> to vector<16x32xf32>
    %cst_34 = arith.constant dense<0.000000e+00> : vector<24x32xf32>
    %72 = tpu.matmul %70, %71, %cst_34 {dimension_numbers = #tpu.dot_dimension_numbers<[1], [0], [0], [1], [0, 0, 1, 1], [], []>} : vector<24x16xf32>, vector<16x32xf32>, vector<24x32xf32> -> vector<24x32xf32>
    %73 = arith.addf %55, %72 : vector<24x32xf32>
    %74 = arith.addf %15, %73 : vector<24x32xf32>
    %75 = vector.broadcast %10 : vector<1x32xf32> to vector<24x32xf32>
    %76 = arith.addf %74, %75 : vector<24x32xf32>
    %cst_35 = arith.constant dense<0.000000e+00> : vector<24xf32>
    %77 = vector.multi_reduction <add>, %76, %cst_35 [1] : vector<24x32xf32> to vector<24xf32>
    %78 = vector.shape_cast %77 : vector<24xf32> to vector<24x1xf32>
    %cst_36 = arith.constant 3.200000e+01 : f32
    %79 = vector.broadcast %cst_36 : f32 to vector<24x1xf32>
    %80 = arith.divf %78, %79 : vector<24x1xf32>
    %81 = vector.broadcast %80 : vector<24x1xf32> to vector<24x32xf32>
    %82 = arith.subf %76, %81 : vector<24x32xf32>
    %83 = arith.mulf %82, %82 : vector<24x32xf32>
    %cst_37 = arith.constant dense<0.000000e+00> : vector<24xf32>
    %84 = vector.multi_reduction <add>, %83, %cst_37 [1] : vector<24x32xf32> to vector<24xf32>
    %85 = vector.shape_cast %84 : vector<24xf32> to vector<24x1xf32>
    %cst_38 = arith.constant 3.200000e+01 : f32
    %86 = vector.broadcast %cst_38 : f32 to vector<24x1xf32>
    %87 = arith.divf %85, %86 : vector<24x1xf32>
    %88 = vector.broadcast %80 : vector<24x1xf32> to vector<24x32xf32>
    %89 = arith.subf %76, %88 : vector<24x32xf32>
    %cst_39 = arith.constant 9.99999974E-6 : f32
    %90 = vector.broadcast %cst_39 : f32 to vector<24x1xf32>
    %91 = arith.addf %87, %90 : vector<24x1xf32>
    %92 = math.rsqrt %91 : vector<24x1xf32>
    %93 = vector.broadcast %92 : vector<24x1xf32> to vector<24x32xf32>
    %94 = arith.mulf %89, %93 : vector<24x32xf32>
    %cst_40 = arith.constant dense<0.000000e+00> : vector<24x32xf32>
    %95 = tpu.matmul %94, %2, %cst_40 {dimension_numbers = #tpu.dot_dimension_numbers<[1], [0], [0], [1], [0, 0, 1, 1], [], []>} : vector<24x32xf32>, vector<32x32xf32>, vector<24x32xf32> -> vector<24x32xf32>
    %96 = vector.broadcast %8 : vector<1x32xf32> to vector<24x32xf32>
    %97 = arith.addf %95, %96 : vector<24x32xf32>
    %cst_41 = arith.constant dense<0.000000e+00> : vector<40x64xf32>
    %98 = tpu.matmul %17, %3, %cst_41 {dimension_numbers = #tpu.dot_dimension_numbers<[1], [0], [0], [1], [0, 0, 1, 1], [], []>} : vector<40x32xf32>, vector<32x64xf32>, vector<40x64xf32> -> vector<40x64xf32>
    %99 = vector.broadcast %9 : vector<1x64xf32> to vector<40x64xf32>
    %100 = arith.addf %98, %99 : vector<40x64xf32>
    %101 = vector.extract_strided_slice %97 {offsets = [0, 0], sizes = [24, 16], strides = [1, 1]} : vector<24x32xf32> to vector<24x16xf32>
    %102 = vector.extract_strided_slice %100 {offsets = [0, 0], sizes = [40, 16], strides = [1, 1]} : vector<40x64xf32> to vector<40x16xf32>
    %103 = vector.extract_strided_slice %100 {offsets = [0, 32], sizes = [40, 16], strides = [1, 1]} : vector<40x64xf32> to vector<40x16xf32>
    "tpu.trace_start"() <{level = 10 : i32, message = "qe,ke->qk"}> : () -> ()
    %cst_42 = arith.constant dense<0.000000e+00> : vector<24x40xf32>
    %104 = tpu.matmul %101, %102, %cst_42 {dimension_numbers = #tpu.dot_dimension_numbers<[1], [1], [0], [0], [0, 0, 1, 0], [], []>} : vector<24x16xf32>, vector<40x16xf32>, vector<24x40xf32> -> vector<24x40xf32>
    "tpu.trace_stop"() : () -> ()
    %cst_43 = arith.constant dense<0xFF800000> : vector<24xf32>
    %105 = vector.multi_reduction <maximumf>, %104, %cst_43 [1] : vector<24x40xf32> to vector<24xf32>
    %106 = vector.shape_cast %105 : vector<24xf32> to vector<24x1xf32>
    %107 = vector.broadcast %106 : vector<24x1xf32> to vector<24x40xf32>
    %108 = arith.subf %104, %107 : vector<24x40xf32>
    %109 = math.exp %108 : vector<24x40xf32>
    %cst_44 = arith.constant dense<0.000000e+00> : vector<24xf32>
    %110 = vector.multi_reduction <add>, %109, %cst_44 [1] : vector<24x40xf32> to vector<24xf32>
    %111 = vector.shape_cast %110 : vector<24xf32> to vector<24x1xf32>
    %112 = tpu.reciprocal %111 {approx = true} : vector<24x1xf32> -> vector<24x1xf32>
    %cst_45 = arith.constant dense<0.000000e+00> : vector<24x16xf32>
    %113 = tpu.matmul %109, %103, %cst_45 {dimension_numbers = #tpu.dot_dimension_numbers<[1], [0], [0], [1], [0, 0, 1, 1], [], []>} : vector<24x40xf32>, vector<40x16xf32>, vector<24x16xf32> -> vector<24x16xf32>
    %114 = vector.broadcast %112 : vector<24x1xf32> to vector<24x16xf32>
    %115 = arith.mulf %113, %114 : vector<24x16xf32>
    %116 = vector.extract_strided_slice %4 {offsets = [0, 0], sizes = [16, 32], strides = [1, 1]} : vector<32x32xf32> to vector<16x32xf32>
    %cst_46 = arith.constant dense<0.000000e+00> : vector<24x32xf32>
    %117 = tpu.matmul %115, %116, %cst_46 {dimension_numbers = #tpu.dot_dimension_numbers<[1], [0], [0], [1], [0, 0, 1, 1], [], []>} : vector<24x16xf32>, vector<16x32xf32>, vector<24x32xf32> -> vector<24x32xf32>
    %118 = vector.extract_strided_slice %97 {offsets = [0, 16], sizes = [24, 16], strides = [1, 1]} : vector<24x32xf32> to vector<24x16xf32>
    %119 = vector.extract_strided_slice %100 {offsets = [0, 16], sizes = [40, 16], strides = [1, 1]} : vector<40x64xf32> to vector<40x16xf32>
    %120 = vector.extract_strided_slice %100 {offsets = [0, 48], sizes = [40, 16], strides = [1, 1]} : vector<40x64xf32> to vector<40x16xf32>
    "tpu.trace_start"() <{level = 10 : i32, message = "qe,ke->qk"}> : () -> ()
    %cst_47 = arith.constant dense<0.000000e+00> : vector<24x40xf32>
    %121 = tpu.matmul %118, %119, %cst_47 {dimension_numbers = #tpu.dot_dimension_numbers<[1], [1], [0], [0], [0, 0, 1, 0], [], []>} : vector<24x16xf32>, vector<40x16xf32>, vector<24x40xf32> -> vector<24x40xf32>
    "tpu.trace_stop"() : () -> ()
    %cst_48 = arith.constant dense<0xFF800000> : vector<24xf32>
    %122 = vector.multi_reduction <maximumf>, %121, %cst_48 [1] : vector<24x40xf32> to vector<24xf32>
    %123 = vector.shape_cast %122 : vector<24xf32> to vector<24x1xf32>
    %124 = vector.broadcast %123 : vector<24x1xf32> to vector<24x40xf32>
    %125 = arith.subf %121, %124 : vector<24x40xf32>
    %126 = math.exp %125 : vector<24x40xf32>
    %cst_49 = arith.constant dense<0.000000e+00> : vector<24xf32>
    %127 = vector.multi_reduction <add>, %126, %cst_49 [1] : vector<24x40xf32> to vector<24xf32>
    %128 = vector.shape_cast %127 : vector<24xf32> to vector<24x1xf32>
    %129 = tpu.reciprocal %128 {approx = true} : vector<24x1xf32> -> vector<24x1xf32>
    %cst_50 = arith.constant dense<0.000000e+00> : vector<24x16xf32>
    %130 = tpu.matmul %126, %120, %cst_50 {dimension_numbers = #tpu.dot_dimension_numbers<[1], [0], [0], [1], [0, 0, 1, 1], [], []>} : vector<24x40xf32>, vector<40x16xf32>, vector<24x16xf32> -> vector<24x16xf32>
    %131 = vector.broadcast %129 : vector<24x1xf32> to vector<24x16xf32>
    %132 = arith.mulf %130, %131 : vector<24x16xf32>
    %133 = vector.extract_strided_slice %4 {offsets = [16, 0], sizes = [16, 32], strides = [1, 1]} : vector<32x32xf32> to vector<16x32xf32>
    %cst_51 = arith.constant dense<0.000000e+00> : vector<24x32xf32>
    %134 = tpu.matmul %132, %133, %cst_51 {dimension_numbers = #tpu.dot_dimension_numbers<[1], [0], [0], [1], [0, 0, 1, 1], [], []>} : vector<24x16xf32>, vector<16x32xf32>, vector<24x32xf32> -> vector<24x32xf32>
    %135 = arith.addf %117, %134 : vector<24x32xf32>
    %136 = arith.addf %76, %135 : vector<24x32xf32>
    %137 = vector.broadcast %11 : vector<1x32xf32> to vector<24x32xf32>
    %138 = arith.addf %136, %137 : vector<24x32xf32>
    %cst_52 = arith.constant dense<0.000000e+00> : vector<24xf32>
    %139 = vector.multi_reduction <add>, %138, %cst_52 [1] : vector<24x32xf32> to vector<24xf32>
    %140 = vector.shape_cast %139 : vector<24xf32> to vector<24x1xf32>
    %cst_53 = arith.constant 3.200000e+01 : f32
    %141 = vector.broadcast %cst_53 : f32 to vector<24x1xf32>
    %142 = arith.divf %140, %141 : vector<24x1xf32>
    %143 = vector.broadcast %142 : vector<24x1xf32> to vector<24x32xf32>
    %144 = arith.subf %138, %143 : vector<24x32xf32>
    %145 = arith.mulf %144, %144 : vector<24x32xf32>
    %cst_54 = arith.constant dense<0.000000e+00> : vector<24xf32>
    %146 = vector.multi_reduction <add>, %145, %cst_54 [1] : vector<24x32xf32> to vector<24xf32>
    %147 = vector.shape_cast %146 : vector<24xf32> to vector<24x1xf32>
    %cst_55 = arith.constant 3.200000e+01 : f32
    %148 = vector.broadcast %cst_55 : f32 to vector<24x1xf32>
    %149 = arith.divf %147, %148 : vector<24x1xf32>
    %150 = vector.broadcast %142 : vector<24x1xf32> to vector<24x32xf32>
    %151 = arith.subf %138, %150 : vector<24x32xf32>
    %cst_56 = arith.constant 9.99999974E-6 : f32
    %152 = vector.broadcast %cst_56 : f32 to vector<24x1xf32>
    %153 = arith.addf %149, %152 : vector<24x1xf32>
    %154 = math.rsqrt %153 : vector<24x1xf32>
    %155 = vector.broadcast %154 : vector<24x1xf32> to vector<24x32xf32>
    %156 = arith.mulf %151, %155 : vector<24x32xf32>
    %cst_57 = arith.constant dense<0.000000e+00> : vector<24x128xf32>
    %157 = tpu.matmul %156, %5, %cst_57 {dimension_numbers = #tpu.dot_dimension_numbers<[1], [0], [0], [1], [0, 0, 1, 1], [], []>} : vector<24x32xf32>, vector<32x128xf32>, vector<24x128xf32> -> vector<24x128xf32>
    %158 = vector.broadcast %12 : vector<1x128xf32> to vector<24x128xf32>
    %159 = arith.addf %157, %158 : vector<24x128xf32>
    %cst_58 = arith.constant 0.000000e+00 : f32
    %160 = vector.broadcast %cst_58 : f32 to vector<24x128xf32>
    %161 = arith.maximumf %159, %160 : vector<24x128xf32>
    %cst_59 = arith.constant dense<0.000000e+00> : vector<24x32xf32>
    %162 = tpu.matmul %161, %6, %cst_59 {dimension_numbers = #tpu.dot_dimension_numbers<[1], [0], [0], [1], [0, 0, 1, 1], [], []>} : vector<24x128xf32>, vector<128x32xf32>, vector<24x32xf32> -> vector<24x32xf32>
    %163 = arith.addf %138, %162 : vector<24x32xf32>
    %164 = vector.broadcast %13 : vector<1x32xf32> to vector<24x32xf32>
    %165 = arith.addf %163, %164 : vector<24x32xf32>
    %c0_60 = arith.constant 0 : index
    %c0_61 = arith.constant 0 : index
    %c0_62 = arith.constant 0 : index
    %166 = vector.load %arg4[%c0_60, %c0_61, %c0_62] : memref<1x24x32xf32, #tpu.memory_space<vmem>>, vector<1x24x32xf32>
    %167 = vector.shape_cast %166 : vector<1x24x32xf32> to vector<24x32xf32>
    %168 = vector.shape_cast %165 : vector<24x32xf32> to vector<1x24x32xf32>
    tpu.vector_store %arg4[%c0_60, %c0_61, %c0_62], %168 {strides = array<i32>} : memref<1x24x32xf32, #tpu.memory_space<vmem>>, vector<1x24x32xf32>,
    return
  }
  func.func @transform_0(%arg0: i32) -> (i32, i32, i32) {
    %c0_i32 = arith.constant 0 : i32
    %c0_i32_0 = arith.constant 0 : i32
    %c0_i32_1 = arith.constant 0 : i32
    return %arg0, %c0_i32, %c0_i32_0 : i32, i32, i32
  }
  func.func @transform_1(%arg0: i32) -> (i32, i32, i32) {
    %c0_i32 = arith.constant 0 : i32
    %c0_i32_0 = arith.constant 0 : i32
    %c0_i32_1 = arith.constant 0 : i32
    return %arg0, %c0_i32, %c0_i32_0 : i32, i32, i32
  }
  func.func @transform_2(%arg0: i32) -> (i32, i32) {
    %c0_i32 = arith.constant 0 : i32
    %c0_i32_0 = arith.constant 0 : i32
    %c0_i32_1 = arith.constant 0 : i32
    return %c0_i32, %c0_i32_0 : i32, i32
  }
  func.func @transform_3(%arg0: i32) -> (i32, i32, i32) {
    %c0_i32 = arith.constant 0 : i32
    %c0_i32_0 = arith.constant 0 : i32
    %c0_i32_1 = arith.constant 0 : i32
    return %arg0, %c0_i32, %c0_i32_0 : i32, i32, i32
  }
}

</mosaic_0001>

<bundles_post_ra>
// kernel: decoder_layer_forward.1
= control target key start
LH: loop header
LB: loop body
LE: loop exit
PB: predicated region body
PF: predicated region fallthrough
CT: control target
= control target key end

     0   :  { %8 = vsyncpa [#allocation3], 0  ;;  %s2330_s0 = inlined_call_operand.hbm [shape: f32[2,24,32], index: 0, kind: input, shape index: {}, may-alias: {0,3}]   ;;  %s2331_s1 = inlined_call_operand.vmem [shape: f32[2,40,32], index: 1, kind: input, shape index: {}]   ;;  %s2332_s2 = inlined_call_operand.vmem [shape: f32[328,128], index: 2, kind: input, shape index: {}]   ;;  %s2333_s3 = inlined_call_operand.hbm [shape: f32[2,24,32], index: 3, kind: output, shape index: {}, may-alias: {0,3}]  }
   0x1   :  { %10 = vsyncpa [#allocation3 + $0x1], 0 }
   0x2   :  { %11 = vsyncpa [#allocation4], 0 }
   0x3   :  { %13 = vsyncpa [#allocation4 + $0x1], 0  ;;  %s1823_s12 = smov 0   ;;  %s1825_s13 = smov 0  }
   0x4   :  { %s1827_s14 = smov 0   ;;  %s1829_s15 = smov 0  }
   0x5 LB: > { %s1844_s16 = sadd.s32 4294967295, %s1791_s15   ;;  %s1450_s17 = sadd.s32 4294967294, %s1791_s15   ;;  %s1791_s15 = sphi %s1829_s15, %s2341_s15   ;;  %s1787_s14 = sphi %s1827_s14, %s2340_s14   ;;  %s1783_s13 = sphi %s1825_s13, %s2339_s13   ;;  %s1779_s12 = sphi %s1823_s12, %s2338_s12  }
   0x6   : > { %s1848_s18 = sadd.s32 1, %s1791_s15   ;;  %s26_s19 = sadd.s32 1, %s1787_s14 }
   0x7   : > { %s23_s20 = ssub.s32 %s1791_s15, %s1848_s18  ;;  %p33_p0 = scmp.ne.s32.totalorder %s1787_s14, %s1783_s13 }
   0x8   : > { %p24_p1 = scmp.eq.s32.totalorder %s23_s20, 0  ;;  %p34_p2 = scmp.eq.s32.totalorder %s1791_s15, 0 }
   0x9   : > { %p39_p3 = scmp.ne.s32.totalorder %s1783_s13, %s1779_s12  ;;  %p40_p4 = scmp.eq.s32.totalorder %s1844_s16, 0 }
   0xa   : > { %s1860_s21 = scalar_select %p24_p1, %s1787_s14, %s26_s19  }
   0xb   : > { %p35_p5 = por %p34_p2, %p33_p0  ;;  %p1862_p6 = por %p40_p4, %p39_p3 }
   0xc   : > { %p110_p7 = scmp.eq.s32.totalorder %s1844_s16, 1  ;;  %p116_p8 = scmp.eq.s32.totalorder %s1450_s17, 1 }
   0xd   : > { %p1452_p9 = scmp.ge.s32.totalorder %s1791_s15, 2  ;;  %p1546_p10 = scmp.lt.s32.totalorder %s1791_s15, 2 }
   0xe   : > { %p1869_p11 = por %p110_p7, %p33_p0  ;;  %p1873_p12 = por %p116_p8, %p39_p3 }
   0xf   : > { %s139_s25 = sand.u32 1, %s1787_s14   ;;  %s1530_s26 = smul.u32 24, %s1791_s15 }
  0x10   : > { %s1529_s27 = smul.u32 24, %s139_s25  ;;  %p1882_p13 = pnand %p1546_p10, %p35_p5 }
  0x11   : > { %s148_s30 = scalar_lea.hbm %s2330_s0, %s1530_s26  ;;  %s140_s8 = scalar_lea.sflag [#allocation3], %s139_s25 }
  0x12   : > { %s149_s5 = sshll.u32 %s148_s30, 4  ;;  %s143_s6 = scalar_lea.vmem [#allocation2], %s1529_s27  ;;  %s150_s5 = int_to_ptr.hbm [resolvable:$true] %s149_s5 }
  0x13   : > { %s151_s7 = sshll.u32 %s143_s6, 4  ;;  %s1695_s9 = sshra.s32 %s150_s5, 4  ;;  %s152_s7 = int_to_ptr.vmem [resolvable:$true] %s151_s7  ;;  %s1696_s9 = int_to_ptr.hbm [resolvable:$true] %s1695_s9 }
  0x14   : > { %s1697_s10 = scalar_lea.hbm %s1696_s9, 24  ;;  %p1699_p1 = pneg %p1882_p13 }
  0x15   : > { %p1698_p0 = scmp.ne.s32.totalorder %s1696_s9, %s1697_s10  ;;  %s1702_s19 = scalar_lea.hbm %s2330_s0, 48 }
  0x16   : > { %p1703_p4 = scmp.lt.s32.totalorder %s1696_s9, %s2330_s0  ;;  %p1704_p5 = scmp.lt.s32.totalorder %s1702_s19, %s1697_s10 }
  0x17   : > { %p1700_p2 = pnand %p1699_p1, %p1698_p0 }
  0x18   : > { %p1705_p7 = por %p1704_p5, %p1703_p4 }
  0x19   : > { %p1701_p3 = pneg %p1700_p2 }
  0x1b   : > { %p1706_p8 = pnand %p1705_p7, %p1701_p3 }
  0x1d   : > { %1709 = shalt.err (!%p1706_p8)
}
  0x1e   : > { %s1793_s25 = smov 128   ;;  %s1794_s27 = smov 8  }
  0x1f   : > { %1541 = dma.hbm_to_vmem [thread:$0]  (!%p1882_p13), %s150_s5, 384, %s152_s7, %s140_s8, %s1793_s25, %s1793_s25, %s1794_s27  }
  0x20   : > { %p1454_p10 = scmp.ge.s32.totalorder %s1791_s15, 1  ;;  %p167_p0 = scmp.lt.s32.totalorder %s1791_s15, 3 }
  0x22   : > { %p168_p1 = pnand %p1454_p10, %p167_p0 }
  0x23   : > { %s1899_s28 = sand.u32 (!%p168_p1), 1, %s1783_s13  }
  0x24   : > { %171 = sbr.rel (%p168_p1) target bundleno = 2759 (0xac7), region = 32  ;;  %s174_s30 = scalar_lea.sflag (!%p168_p1), [#allocation3], %s1899_s28 }
  0x25   : > { %s1531_s29 = smul.u32 (!%p168_p1), 24, %s1899_s28 }
  0x27   : > { %s177_s6 = scalar_lea.vmem (!%p168_p1), [#allocation2], %s1531_s29 }
  0x29   : > { %1770 = dma.done.wait (%p1862_p6), %s174_s30, 384  }
  0x2a   : > { %1772 = vsyncadd (%p1862_p6), %s174_s30, 4294966912  ;;  %vm266_vm0 = vcmask 261120   ;;  %v1909_v0 = vld [vmem:[%s177_s6 + $0x10] sm:$0xff]  ;;  %v1911_v1 = vld [vmem:[%s177_s6 + $0x8] sm:$0xff]  ;;  %v1795_v6 = vmov 32.0   ;;  %s1796_s20 = smov 96  }
  0x2b   : > { %v273_v2 = vsel %vm266_vm0, %v1909_v0, 0.0  ;;  %v270_v3 = vsel %vm266_vm0, %v1911_v1, 0.0  ;;  %v1917_v4 = vld [vmem:[%s177_s6] sm:$0xff]  ;;  %1627 = vrcp.f32 %v1795_v6  ;;  %v213_v29 = vld [vmem:[%s2332_s2 + $0x10] sm:$0xff]  ;;  %v212_v30 = vld [vmem:[%s2332_s2 + $0x8] sm:$0xff]  ;;  %s1797_s26 = smov 80  }
  0x2c   : > { %274 = vadd.xlane.f32.xlu0 %v273_v2  ;;  %271 = vadd.xlane.f32.xlu1 %v270_v3  ;;  %v267_v5 = vsel %vm266_vm0, %v1917_v4, 0.0  ;;  %v214_v28 = vld [vmem:[%s2332_s2 + $0x18] sm:$0xff]  ;;  %v211_v31 = vld [vmem:[%s2332_s2] sm:$0xff]  ;;  %s1798_s25 = smov 112   ;;  %s1799_s27 = smov 64   ;;  %vm385_vm11 = vcmask 130048  }
  0x2d   : > { %1525 = vmatpush.msra.mxu3 %v214_v28  ;;  %362 = vmatpush.msra.mxu1 %v214_v28  ;;  %v1620_v3 = vld [vmem:[%s2332_s2 + $0x140] ss:$0 sm:$0xff]  ;;  %vm424_vm12 = vcmask 195584   ;;  %s1800_s30 = smov 48   ;;  %p206_p6 = scmp.lt.s32.totalorder %s1844_s16, 1 }
  0x2e   : > { %s1533_s6 = smul.u32 24, %s1844_s16 }
  0x2f   : > { %1526 = vmatpush.msra.mxu3 %v213_v29  ;;  %363 = vmatpush.msra.mxu1 %v213_v29  ;;  %s207_s19 = scalar_select %p206_p6, %s1844_s16, 1 }
  0x30   : > { %s1361_s5 = scalar_lea.hbm %s2333_s3, %s1533_s6 }
  0x31   : > { %v1628_v7 = vpop.eup %1627  ;;  %1527 = vmatpush.msra.mxu3 %v212_v30  ;;  %364 = vmatpush.msra.mxu1 %v212_v30  ;;  %s1364_s8 = sshll.u32 %s1361_s5, 4  ;;  %s1365_s8 = int_to_ptr.hbm [resolvable:$true] %s1364_s8 }
  0x32   : > { %v277_v8 = vmul.f32 32.0, %v1628_v7  ;;  %vm281_vm1 = vweird.f32 %v1628_v7  ;;  %s1739_s9 = sshra.s32 %s1365_s8, 4  ;;  %s1740_s9 = int_to_ptr.hbm [resolvable:$true] %s1739_s9 }
  0x33   : > { %1528 = vmatpush.msra.mxu3 %v211_v31  ;;  %365 = vmatpush.msra.mxu1 %v211_v31  ;;  %p1746_p4 = scmp.lt.s32.totalorder %s1740_s9, %s2333_s3 }
  0x34   : > { %268 = vadd.xlane.f32.xlu0 %v267_v5  ;;  %v278_v9 = vsub.f32 1.0, %v277_v8 }
  0x36   : > { %v279_v10 = vmul.f32 %v1628_v7, %v278_v9 }
  0x38   : > { %v280_v11 = vadd.f32 %v1628_v7, %v279_v10 }
  0x3a   : > { %v1921_v12 = vsel %vm281_vm1, %v1628_v7, %v280_v11 }
  0x9f   : > { %v275_v13 = vpop.xlane.xlu0 %274  ;;  %v272_v17 = vpop.xlane.xlu1 %271 }
  0xa0   : > { %v285_v14 = vmul.f32 %v1921_v12, %v275_v13  ;;  %v284_v21 = vmul.f32 %v1921_v12, %v272_v17 }
  0xa2   : > { %v288_v15 = vsub.f32 %v1909_v0, %v285_v14  ;;  %v1930_v23 = vsub.f32 %v1911_v1, %v284_v21 }
  0xa4   : > { %v291_v16 = vmul.f32 %v288_v15, %v288_v15  ;;  %v290_v26 = vmul.f32 %v1930_v23, %v1930_v23 }
  0xa6   : > { %v298_v18 = vsel %vm266_vm0, %v291_v16, 0.0  ;;  %v295_v27 = vsel %vm266_vm0, %v290_v26, 0.0 }
  0xa7   : > { %299 = vadd.xlane.f32.xlu1 %v298_v18  ;;  %v269_v19 = vpop.xlane.xlu0 %268 }
  0xa8   : > { %v283_v20 = vmul.f32 %v1921_v12, %v269_v19 }
  0xaa   : > { %v286_v22 = vsub.f32 %v1917_v4, %v283_v20 }
  0xac   : > { %v289_v24 = vmul.f32 %v286_v22, %v286_v22 }
  0xae   : > { %v292_v25 = vsel %vm266_vm0, %v289_v24, 0.0 }
  0xaf   : > { %293 = vadd.xlane.f32.xlu2 %v292_v25 }
  0xb7   : > { %296 = vadd.xlane.f32.xlu2 %v295_v27 }
 0x11a   : > { %v300_v32 = vpop.xlane.xlu1 %299 }
 0x11b   : > { %v303_v33 = vmul.f32 %v300_v32, %v1921_v12 }
 0x11d   : > { %v306_v34 = vadd.f32 1e-05, %v303_v33 }
 0x11f   : > { %1629 = vrsqrt.f32 %v306_v34  ;;  %vm333_vm3 = vweird.f32 %v306_v34 }
 0x122   : > { %v294_v35 = vpop.xlane.xlu2 %293 }
 0x123   : > { %v301_v36 = vmul.f32 %v294_v35, %v1921_v12 }
 0x125   : > { %v1630_v37 = vpop.eup %1629  ;;  %v304_v38 = vadd.f32 1e-05, %v301_v36 }
 0x126   : > { %v328_v39 = vmul.f32 %v1630_v37, %v306_v34  ;;  %vm334_vm2 = vweird.f32 %v1630_v37 }
 0x127   : > { %1631 = vrsqrt.f32 %v304_v38  ;;  %vm335_vm4 = vmor %vm333_vm3, %vm334_vm2  ;;  %vm313_vm6 = vweird.f32 %v304_v38 }
 0x128   : > { %v329_v40 = vmul.f32 %v1630_v37, %v328_v39 }
 0x12a   : > { %v330_v41 = vmul.f32 0.5, %v329_v40  ;;  %v297_v42 = vpop.xlane.xlu2 %296 }
 0x12b   : > { %v302_v43 = vmul.f32 %v297_v42, %v1921_v12 }
 0x12c   : > { %v331_v44 = vsub.f32 1.5, %v330_v41 }
 0x12d   : > { %v1632_v45 = vpop.eup %1631  ;;  %v305_v46 = vadd.f32 1e-05, %v302_v43 }
 0x12e   : > { %v308_v47 = vmul.f32 %v1632_v45, %v304_v38  ;;  %v332_v48 = vmul.f32 %v1630_v37, %v331_v44  ;;  %vm314_vm5 = vweird.f32 %v1632_v45 }
 0x12f   : > { %1633 = vrsqrt.f32 %v305_v46  ;;  %vm315_vm7 = vmor %vm313_vm6, %vm314_vm5  ;;  %vm323_vm9 = vweird.f32 %v305_v46 }
 0x130   : > { %v309_v49 = vmul.f32 %v1632_v45, %v308_v47  ;;  %v336_v50 = vsel %vm335_vm4, %v1630_v37, %v332_v48 }
 0x131   : > { %v339_v51 = vmul.f32 %v336_v50, %v288_v15 }
 0x132   : > { %v310_v52 = vmul.f32 0.5, %v309_v49 }
 0x133   : > { %1458 = vmatmul.msk.f32.vlgmr.msra.gmra.mxu3 %vm266_vm0, %v339_v51 }
 0x134   : > { %v311_v53 = vsub.f32 1.5, %v310_v52 }
 0x135   : > { %v1634_v54 = vpop.eup %1633 }
 0x136   : > { %v318_v55 = vmul.f32 %v1634_v54, %v305_v46  ;;  %v312_v56 = vmul.f32 %v1632_v45, %v311_v53  ;;  %vm324_vm8 = vweird.f32 %v1634_v54 }
 0x137   : > { %vm325_vm10 = vmor %vm323_vm9, %vm324_vm8 }
 0x138   : > { %v319_v57 = vmul.f32 %v1634_v54, %v318_v55  ;;  %v316_v58 = vsel %vm315_vm7, %v1632_v45, %v312_v56  ;;  %vm906_vm7 = vcmask 326656  }
 0x139   : > { %v337_v59 = vmul.f32 %v316_v58, %v286_v22 }
 0x13a   : > { %v320_v60 = vmul.f32 0.5, %v319_v57 }
 0x13b   : > { %1456 = vmatmul.msk.f32.vlgmr.msra.gmra.mxu1 %vm266_vm0, %v337_v59 }
 0x13c   : > { %v321_v61 = vsub.f32 1.5, %v320_v60 }
 0x13e   : > { %v322_v62 = vmul.f32 %v1634_v54, %v321_v61 }
 0x140   : > { %v326_v63 = vsel %vm325_vm10, %v1634_v54, %v322_v62 }
 0x141   : > { %v338_v2 = vmul.f32 %v326_v63, %v1930_v23 }
 0x143   : > { %1457 = vmatmul.msk.f32.gmra.mxu1 %vm266_vm0, %v338_v2 }
 0x1b6   : > { %v373_v5 = vpop.f32.mrf.mxu3 }
 0x1b7   : > { %v374_v6 = vadd.f32 %v1620_v3, %v373_v5 }
 0x1b8   : > { %v367_v7 = vpop.f32.mrf.mxu1 }
 0x1b9   : > { %v1958_v8 = vadd.f32 %v1620_v3, %v367_v7  ;;  %383 = vrot.lane.b32.xlu0 %v374_v6, %s1796_s20 }
 0x1bb   : > { %379 = vrot.lane.b32.xlu2 %v1958_v8, %s1796_s20 }
 0x1c0   : > { %v370_v9 = vpop.f32.mrf.mxu1 }
 0x1c1   : > { %v371_v10 = vadd.f32 %v1620_v3, %v370_v9  ;;  %512 = vrot.lane.b32.xlu0 %v374_v6, %s1797_s26 }
 0x1c3   : > { %381 = vrot.lane.b32.xlu1 %v371_v10, %s1796_s20  ;;  %510 = vrot.lane.b32.xlu2 %v371_v10, %s1797_s26  ;;  %v1590_v11 = vpack.i.bf16 %v371_v10, %v374_v6 }
 0x1c9   : > { %502 = vrot.lane.b32.xlu0 %v1958_v8, %s1798_s25 }
 0x1cb   : > { %508 = vrot.lane.b32.xlu1 %v1958_v8, %s1797_s26  ;;  %504 = vrot.lane.b32.xlu2 %v371_v10, %s1798_s25 }
 0x1d3   : > { %506 = vrot.lane.b32.xlu1 %v374_v6, %s1798_s25  ;;  %455 = vrot.lane.b32.xlu2 %v1958_v8, %s1799_s27 }
 0x1db   : > { %1591 = vrot.lane.b32.xlu2 %v1590_v11, %s1799_s27  ;;  %s1532_s27 = smul.u32 40, %s207_s19 }
 0x1dd   : > { %s2055_s10 = scalar_lea.vmem %s2331_s1, %s1532_s27 }
 0x215   : > { %v380_v13 = vpop.permute.xlu2 %379 }
 0x21d   : > { %v511_v14 = vpop.permute.xlu2 %510 }
 0x225   : > { %v505_v15 = vpop.permute.xlu2 %504 }
 0x22b   : > { %v384_v16 = vpop.permute.xlu0 %383 }
 0x22c   : > { %1459 = vmatpush.xpose.msk.msrb.mxu1 %vm385_vm11, %v384_v16 }
 0x22d   : > { %v456_v17 = vpop.permute.xlu2 %455 }
 0x233   : > { %v513_v18 = vpop.permute.xlu0 %512 }
 0x234   : > { %1468 = vmatpush.xpose.msk.msrb.mxu3 %vm385_vm11, %v513_v18 }
 0x235   : > { %v382_v19 = vpop.permute.xlu1 %381  ;;  %v1592_v20 = vpop.permute.xlu2 %1591 }
 0x236   : > { %1460 = vmatpush.xpose.msk.msrb.mxu1 %vm385_vm11, %v382_v19  ;;  %v1593_v21 = vunpack.i.l.bf16 %v1592_v20  ;;  %v1594_v22 = vunpack.i.h.bf16 %v1592_v20 }
 0x238   : > { %486 = vmatpush.msra.mxu2 %v1593_v21  ;;  %1469 = vmatpush.xpose.msk.msrb.mxu3 %vm385_vm11, %v511_v14 }
 0x23a   : > { %1461 = vmatpush.xpose.msk.msrb.mxu1 %vm385_vm11, %v380_v13  ;;  %487 = vmatpush.msra.mxu2 %v1594_v22  ;;  %v215_v13 = vld [vmem:[%s2332_s2 + $0x20] sm:$0xff] }
 0x23b   : > { %v503_v24 = vpop.permute.xlu0 %502 }
 0x23c   : > { %488 = vmatpush.msra.mxu2 %v456_v17  ;;  %v217_v17 = vld [vmem:[%s2332_s2 + $0x30] sm:$0xff] }
 0x23d   : > { %v509_v23 = vpop.permute.xlu1 %508  ;;  %1462 = vmatmul.msk.f32.vlgmr.msrb.gmra.mxu1 %vm385_vm11, %v1958_v8 }
 0x23e   : > { %1470 = vmatpush.xpose.msk.msrb.mxu3 %vm385_vm11, %v509_v23 }
 0x241   : > { %1471 = vmatmul.msk.f32.vlgmr.msrb.gmra.mxu3 %vm385_vm11, %v503_v24 }
 0x245   : > { %1463 = vmatmul.msk.f32.gmra.mxu1 %vm385_vm11, %v371_v10  ;;  %v507_v25 = vpop.permute.xlu1 %506 }
 0x249   : > { %1472 = vmatmul.msk.f32.gmra.mxu3 %vm385_vm11, %v505_v15  ;;  %v218_v15 = vld [vmem:[%s2332_s2 + $0x38] sm:$0xff] }
 0x24a   : > { %652 = vmatpush.msra.mxu0 %v218_v15 }
 0x24c   : > { %653 = vmatpush.msra.mxu0 %v217_v17  ;;  %v264_v17 = vld [vmem:[%s2055_s10 + $0x18] sm:$0xff] }
 0x24d   : > { %1464 = vmatmul.msk.f32.gmra.mxu1 %vm385_vm11, %v374_v6 }
 0x251   : > { %1473 = vmatmul.msk.f32.gmra.mxu3 %vm385_vm11, %v507_v25 }
 0x2ba   : > { %v415_v26 = vpop.f32.mrf.mxu1 }
 0x2bb   : > { %v425_v27 = vsel %vm424_vm12, %v415_v26, -inf }
 0x2bc   : > { %426 = vmax.xlane.f32.xlu0 %v425_v27 }
 0x2c2   : > { %v418_v28 = vpop.f32.mrf.mxu1 }
 0x2c3   : > { %v428_v29 = vsel %vm424_vm12, %v418_v28, -inf }
 0x2c4   : > { %429 = vmax.xlane.f32.xlu1 %v428_v29  ;;  %v543_v30 = vpop.f32.mrf.mxu3 }
 0x2c5   : > { %v552_v31 = vsel %vm424_vm12, %v543_v30, -inf }
 0x2c6   : > { %553 = vmax.xlane.f32.xlu0 %v552_v31 }
 0x2ca   : > { %v421_v32 = vpop.f32.mrf.mxu1 }
 0x2cb   : > { %v431_v33 = vsel %vm424_vm12, %v421_v32, -inf }
 0x2cc   : > { %432 = vmax.xlane.f32.xlu2 %v431_v33  ;;  %v546_v34 = vpop.f32.mrf.mxu3 }
 0x2cd   : > { %v555_v35 = vsel %vm424_vm12, %v546_v34, -inf }
 0x2ce   : > { %556 = vmax.xlane.f32.xlu0 %v555_v35 }
 0x2d4   : > { %v549_v36 = vpop.f32.mrf.mxu3 }
 0x2d5   : > { %v558_v37 = vsel %vm424_vm12, %v549_v36, -inf }
 0x2d6   : > { %559 = vmax.xlane.f32.xlu2 %v558_v37 }
 0x2dd   : > { %1596 = vrot.lane.b32.xlu1 %v1590_v11, %s1800_s30  ;;  %v216_v11 = vld [vmem:[%s2332_s2 + $0x28] sm:$0xff] }
 0x2de   : > { %687 = vmatpush.msra.mxu1 %v216_v11 }
 0x2e0   : > { %688 = vmatpush.msra.mxu1 %v215_v13 }
 0x2e2   : > { %582 = vrot.lane.b32.xlu0 %v1958_v8, %s1800_s30  ;;  %s205_s30 = scalar_lea.vmem [#allocation5], %s1531_s29  ;;  %s1350_s29 = scalar_lea.sflag [#allocation4], %s1899_s28 }
 0x2e3   : > { %s1362_s7 = sshll.u32 %s205_s30, 4  ;;  %s1363_s7 = int_to_ptr.vmem [resolvable:$true] %s1362_s7 }
 0x32f   : > { %v427_v38 = vpop.xlane.xlu0 %426 }
 0x330   : > { %v434_v39 = vsub.f32 %v415_v26, %v427_v38 }
 0x332   : > { %v437_v40 = vmul.f32 1.442695, %v434_v39 }
 0x334   : > { %1635 = vpow2.f32 %v437_v40 }
 0x337   : > { %v430_v41 = vpop.xlane.xlu1 %429 }
 0x338   : > { %v435_v42 = vsub.f32 %v418_v28, %v430_v41 }
 0x339   : > { %v554_v43 = vpop.xlane.xlu0 %553 }
 0x33a   : > { %v1636_v44 = vpop.eup %1635  ;;  %v439_v45 = vmul.f32 1.442695, %v435_v42  ;;  %v561_v46 = vsub.f32 %v543_v30, %v554_v43  ;;  %v1621_v43 = vld [vmem:[%s2332_s2 + $0x143] ss:$0 sm:$0xff] }
 0x33b   : > { %1465 = vmatmul.msk.f32.vlgmr.msra.gmra.mxu2 %vm424_vm12, %v1636_v44  ;;  %v443_v47 = vsel %vm424_vm12, %v1636_v44, 0.0 }
 0x33c   : > { %1637 = vpow2.f32 %v439_v45  ;;  %v564_v48 = vmul.f32 1.442695, %v561_v46  ;;  %444 = vadd.xlane.f32.xlu2 %v443_v47 }
 0x33e   : > { %1639 = vpow2.f32 %v564_v48 }
 0x33f   : > { %v433_v49 = vpop.xlane.xlu2 %432 }
 0x340   : > { %v436_v50 = vsub.f32 %v421_v32, %v433_v49 }
 0x341   : > { %v557_v51 = vpop.xlane.xlu0 %556 }
 0x342   : > { %v1638_v52 = vpop.eup %1637  ;;  %v441_v53 = vmul.f32 1.442695, %v436_v50  ;;  %v562_v54 = vsub.f32 %v546_v34, %v557_v51 }
 0x343   : > { %1466 = vmatmul.msk.f32.gmra.mxu2 %vm424_vm12, %v1638_v52  ;;  %v446_v55 = vsel %vm424_vm12, %v1638_v52, 0.0 }
 0x344   : > { %v1640_v56 = vpop.eup %1639  ;;  %1641 = vpow2.f32 %v441_v53  ;;  %v566_v57 = vmul.f32 1.442695, %v562_v54  ;;  %447 = vadd.xlane.f32.xlu2 %v446_v55 }
 0x345   : > { %v570_v58 = vsel %vm424_vm12, %v1640_v56, 0.0 }
 0x346   : > { %1643 = vpow2.f32 %v566_v57  ;;  %571 = vadd.xlane.f32.xlu1 %v570_v58  ;;  %v225_v58 = vld [vmem:[%s2332_s2 + $0x70] sm:$0xff] }
 0x349   : > { %v560_v59 = vpop.xlane.xlu2 %559 }
 0x34a   : > { %v1642_v60 = vpop.eup %1641  ;;  %v563_v61 = vsub.f32 %v549_v36, %v560_v59  ;;  %v223_v59 = vld [vmem:[%s2332_s2 + $0x60] sm:$0xff] }
 0x34b   : > { %1467 = vmatmul.msk.f32.gmra.mxu2 %vm424_vm12, %v1642_v60  ;;  %v449_v62 = vsel %vm424_vm12, %v1642_v60, 0.0  ;;  %v261_v60 = vld [vmem:[%s2055_s10] sm:$0xff] }
 0x34c   : > { %v1644_v63 = vpop.eup %1643  ;;  %v568_v2 = vmul.f32 1.442695, %v563_v61  ;;  %450 = vadd.xlane.f32.xlu2 %v449_v62 }
 0x34d   : > { %v573_v3 = vsel %vm424_vm12, %v1644_v63, 0.0 }
 0x34e   : > { %1645 = vpow2.f32 %v568_v2  ;;  %574 = vadd.xlane.f32.xlu0 %v573_v3  ;;  %v262_v3 = vld [vmem:[%s2055_s10 + $0x8] sm:$0xff] }
 0x34f   : > { %v1597_v5 = vpop.permute.xlu1 %1596 }
 0x350   : > { %v1598_v6 = vunpack.i.l.bf16 %v1597_v5  ;;  %v1599_v7 = vunpack.i.h.bf16 %v1597_v5 }
 0x352   : > { %613 = vmatpush.msrb.mxu2 %v1598_v6 }
 0x354   : > { %v1646_v8 = vpop.eup %1645  ;;  %v583_v9 = vpop.permute.xlu0 %582  ;;  %614 = vmatpush.msrb.mxu2 %v1599_v7 }
 0x355   : > { %v576_v10 = vsel %vm424_vm12, %v1646_v8, 0.0 }
 0x356   : > { %577 = vadd.xlane.f32.xlu2 %v576_v10  ;;  %615 = vmatpush.msrb.mxu2 %v583_v9  ;;  %v263_v10 = vld [vmem:[%s2055_s10 + $0x10] sm:$0xff] }
 0x357   : > { %1474 = vmatmul.msk.f32.vlgmr.msrb.gmra.mxu2 %vm424_vm12, %v1640_v56 }
 0x35f   : > { %1475 = vmatmul.msk.f32.gmra.mxu2 %vm424_vm12, %v1644_v63 }
 0x367   : > { %1476 = vmatmul.msk.f32.gmra.mxu2 %vm424_vm12, %v1646_v8 }
 0x3af   : > { %v445_v14 = vpop.xlane.xlu2 %444 }
 0x3b0   : > { %1647 = vrcp.f32 %v445_v14 }
 0x3b6   : > { %v1648_v18 = vpop.eup %1647 }
 0x3b7   : > { %v448_v16 = vpop.xlane.xlu2 %447 }
 0x3b8   : > { %1649 = vrcp.f32 %v448_v16 }
 0x3b9   : > { %v572_v28 = vpop.xlane.xlu1 %571 }
 0x3be   : > { %v490_v19 = vpop.f32.mrf.mxu2  ;;  %v1650_v22 = vpop.eup %1649 }
 0x3bf   : > { %v499_v20 = vmul.f32 %v1648_v18, %v490_v19  ;;  %v451_v21 = vpop.xlane.xlu2 %450  ;;  %v265_v19 = vld [vmem:[%s2055_s10 + $0x20] sm:$0xff]  ;;  %s1741_s10 = scalar_lea.hbm %s1740_s9, 24 }
 0x3c0   : > { %1651 = vrcp.f32 %v451_v21  ;;  %v221_v21 = vld [vmem:[%s2332_s2 + $0x50] sm:$0xff]  ;;  %p1742_p13 = scmp.ne.s32.totalorder %s1740_s9, %s1741_s10 }
 0x3c1   : > { %1480 = vmatmul.msk.f32.vlgmr.msra.gmra.mxu1 %vm385_vm11, %v499_v20  ;;  %1653 = vrcp.f32 %v572_v28  ;;  %v575_v29 = vpop.xlane.xlu0 %574  ;;  %v222_v20 = vld [vmem:[%s2332_s2 + $0x58] sm:$0xff] }
 0x3c2   : > { %1655 = vrcp.f32 %v575_v29  ;;  %794 = vmatpush.msra.mxu3 %v222_v20  ;;  %p1743_p2 = pnand %p1742_p13, %p1869_p11 }
 0x3c4   : > { %795 = vmatpush.msra.mxu3 %v221_v21  ;;  %p1744_p3 = pneg %p1743_p2 }
 0x3c6   : > { %v493_v23 = vpop.f32.mrf.mxu2  ;;  %v1652_v25 = vpop.eup %1651 }
 0x3c7   : > { %v500_v24 = vmul.f32 %v1650_v22, %v493_v23  ;;  %v1654_v30 = vpop.eup %1653  ;;  %v220_v22 = vld [vmem:[%s2332_s2 + $0x48] sm:$0xff]  ;;  %v219_v23 = vld [vmem:[%s2332_s2 + $0x40] sm:$0xff] }
 0x3c8   : > { %v1656_v34 = vpop.eup %1655  ;;  %796 = vmatpush.msra.mxu3 %v220_v22 }
 0x3c9   : > { %1481 = vmatmul.msk.f32.gmra.mxu1 %vm385_vm11, %v500_v24  ;;  %v578_v33 = vpop.xlane.xlu2 %577 }
 0x3ca   : > { %1657 = vrcp.f32 %v578_v33  ;;  %797 = vmatpush.msra.mxu3 %v219_v23 }
 0x3ce   : > { %v496_v26 = vpop.f32.mrf.mxu2 }
 0x3cf   : > { %v501_v27 = vmul.f32 %v1652_v25, %v496_v26 }
 0x3d0   : > { %v1658_v37 = vpop.eup %1657 }
 0x3d1   : > { %1482 = vmatmul.msk.f32.gmra.mxu1 %vm385_vm11, %v501_v27 }
 0x3da   : > { %v617_v31 = vpop.f32.mrf.mxu2 }
 0x3db   : > { %v626_v32 = vmul.f32 %v1654_v30, %v617_v31 }
 0x3dd   : > { %1477 = vmatmul.msk.f32.vlgmr.msra.gmra.mxu0 %vm385_vm11, %v626_v32 }
 0x3e2   : > { %v620_v35 = vpop.f32.mrf.mxu2 }
 0x3e3   : > { %v627_v36 = vmul.f32 %v1656_v34, %v620_v35 }
 0x3e5   : > { %1478 = vmatmul.msk.f32.gmra.mxu0 %vm385_vm11, %v627_v36 }
 0x3ea   : > { %v623_v38 = vpop.f32.mrf.mxu2 }
 0x3eb   : > { %v628_v39 = vmul.f32 %v1658_v37, %v623_v38 }
 0x3ed   : > { %1479 = vmatmul.msk.f32.gmra.mxu0 %vm385_vm11, %v628_v39 }
 0x43e   : > { %v690_v40 = vpop.f32.mrf.mxu1 }
 0x446   : > { %v693_v46 = vpop.f32.mrf.mxu1 }
 0x44e   : > { %v696_v53 = vpop.f32.mrf.mxu1 }
 0x45a   : > { %v655_v41 = vpop.f32.mrf.mxu0 }
 0x45b   : > { %v691_v42 = vadd.f32 %v690_v40, %v655_v41 }
 0x45d   : > { %v699_v44 = vadd.f32 %v691_v42, %v1917_v4 }
 0x45f   : > { %v2027_v45 = vadd.f32 %v1621_v43, %v699_v44 }
 0x461   : > { %v706_v47 = vsel %vm266_vm0, %v2027_v45, 0.0 }
 0x462   : > { %707 = vadd.xlane.f32.xlu2 %v706_v47  ;;  %v658_v48 = vpop.f32.mrf.mxu0 }
 0x463   : > { %v694_v49 = vadd.f32 %v693_v46, %v658_v48  ;;  %v1622_v48 = vld [vmem:[%s2332_s2 + $0x142] ss:$0 sm:$0xff] }
 0x465   : > { %v700_v50 = vadd.f32 %v694_v49, %v1911_v1  ;;  %v226_v1 = vld [vmem:[%s2332_s2 + $0x78] sm:$0xff] }
 0x466   : > { %836 = vmatpush.msra.mxu2 %v226_v1 }
 0x467   : > { %v2032_v51 = vadd.f32 %v1621_v43, %v700_v50 }
 0x468   : > { %837 = vmatpush.msra.mxu2 %v225_v58 }
 0x469   : > { %v709_v52 = vsel %vm266_vm0, %v2032_v51, 0.0 }
 0x46a   : > { %710 = vadd.xlane.f32.xlu2 %v709_v52  ;;  %v661_v4 = vpop.f32.mrf.mxu0 }
 0x46b   : > { %v697_v54 = vadd.f32 %v696_v53, %v661_v4 }
 0x46d   : > { %v701_v55 = vadd.f32 %v697_v54, %v1909_v0  ;;  %v224_v0 = vld [vmem:[%s2332_s2 + $0x68] sm:$0xff] }
 0x46e   : > { %838 = vmatpush.msra.mxu2 %v224_v0 }
 0x46f   : > { %v2037_v56 = vadd.f32 %v1621_v43, %v701_v55 }
 0x470   : > { %839 = vmatpush.msra.mxu2 %v223_v59 }
 0x471   : > { %v712_v57 = vsel %vm266_vm0, %v2037_v56, 0.0  ;;  %1486 = vmatmul.msk.f32.vlgmr.msra.gmra.mxu2 %vm266_vm0, %v261_v60 }
 0x472   : > { %713 = vadd.xlane.f32.xlu1 %v712_v57 }
 0x479   : > { %1487 = vmatmul.msk.f32.gmra.mxu2 %vm266_vm0, %v262_v3 }
 0x481   : > { %1488 = vmatmul.msk.f32.gmra.mxu2 %vm266_vm0, %v263_v10 }
 0x489   : > { %1489 = vmatmul.msk.f32.gmra.mxu2 %vm266_vm0, %v264_v17 }
 0x491   : > { %1490 = vmatmul.msk.f32.gmra.mxu2 %vm266_vm0, %v265_v19 }
 0x4d5   : > { %v708_v61 = vpop.xlane.xlu2 %707 }
 0x4d6   : > { %v715_v62 = vmul.f32 %v708_v61, %v1921_v12 }
 0x4d8   : > { %v718_v63 = vsub.f32 %v2027_v45, %v715_v62 }
 0x4da   : > { %v721_v2 = vmul.f32 %v718_v63, %v718_v63 }
 0x4dc   : > { %v724_v5 = vsel %vm266_vm0, %v721_v2, 0.0 }
 0x4dd   : > { %725 = vadd.xlane.f32.xlu2 %v724_v5  ;;  %v711_v6 = vpop.xlane.xlu2 %710 }
 0x4de   : > { %v716_v7 = vmul.f32 %v711_v6, %v1921_v12 }
 0x4e0   : > { %v2069_v8 = vsub.f32 %v2032_v51, %v716_v7 }
 0x4e2   : > { %v722_v9 = vmul.f32 %v2069_v8, %v2069_v8 }
 0x4e4   : > { %v727_v11 = vsel %vm266_vm0, %v722_v9, 0.0  ;;  %v1623_v9 = vld [vmem:[%s2332_s2 + $0x141] ss:$0 sm:$0xff] }
 0x4e5   : > { %728 = vadd.xlane.f32.xlu0 %v727_v11  ;;  %v714_v13 = vpop.xlane.xlu1 %713 }
 0x4e6   : > { %v717_v14 = vmul.f32 %v714_v13, %v1921_v12 }
 0x4e8   : > { %v2078_v15 = vsub.f32 %v2037_v56, %v717_v14 }
 0x4ea   : > { %v723_v16 = vmul.f32 %v2078_v15, %v2078_v15 }
 0x4ec   : > { %v730_v18 = vsel %vm266_vm0, %v723_v16, 0.0 }
 0x4ed   : > { %731 = vadd.xlane.f32.xlu1 %v730_v18 }
 0x4f4   : > { %v841_v29 = vpop.f32.mrf.mxu2 }
 0x4f5   : > { %v2115_v6 = vadd.f32 %v1622_v48, %v841_v29 }
 0x4fc   : > { %v844_v37 = vpop.f32.mrf.mxu2 }
 0x4fd   : > { %v845_v2 = vadd.f32 %v1622_v48, %v844_v37 }
 0x504   : > { %v847_v49 = vpop.f32.mrf.mxu2 }
 0x505   : > { %v848_v52 = vadd.f32 %v1622_v48, %v847_v49 }
 0x507   : > { %1000 = vrot.lane.b32.xlu1 %v848_v52, %s1798_s25  ;;  %v1605_v21 = vpack.i.bf16 %v845_v2, %v848_v52 }
 0x50c   : > { %v850_v0 = vpop.f32.mrf.mxu2 }
 0x50d   : > { %v851_v60 = vadd.f32 %v1622_v48, %v850_v0 }
 0x50f   : > { %1002 = vrot.lane.b32.xlu0 %v851_v60, %s1798_s25 }
 0x514   : > { %v853_v3 = vpop.f32.mrf.mxu2 }
 0x515   : > { %v854_v5 = vadd.f32 %v1622_v48, %v853_v3 }
 0x517   : > { %998 = vrot.lane.b32.xlu0 %v845_v2, %s1798_s25  ;;  %1004 = vrot.lane.b32.xlu2 %v854_v5, %s1798_s25  ;;  %v1600_v20 = vpack.i.bf16 %v851_v60, %v854_v5 }
 0x518   : > { %1491 = vmatpush.xpose.msk.msrb.mxu0 %vm385_vm11, %v854_v5 }
 0x51c   : > { %1492 = vmatpush.xpose.msk.msrb.mxu0 %vm385_vm11, %v851_v60 }
 0x51f   : > { %996 = vrot.lane.b32.xlu2 %v2115_v6, %s1798_s25 }
 0x520   : > { %1493 = vmatpush.xpose.msk.msrb.mxu0 %vm385_vm11, %v848_v52 }
 0x524   : > { %1494 = vmatpush.xpose.msk.msrb.mxu0 %vm385_vm11, %v845_v2 }
 0x528   : > { %1495 = vmatpush.xpose.msk.msrb.mxu0 %vm385_vm11, %v2115_v6 }
 0x550   : > { %v726_v24 = vpop.xlane.xlu2 %725 }
 0x551   : > { %v733_v25 = vmul.f32 %v726_v24, %v1921_v12 }
 0x553   : > { %v736_v26 = vadd.f32 1e-05, %v733_v25 }
 0x555   : > { %1659 = vrsqrt.f32 %v736_v26  ;;  %vm745_vm14 = vweird.f32 %v736_v26 }
 0x558   : > { %v729_v27 = vpop.xlane.xlu0 %728 }
 0x559   : > { %v734_v28 = vmul.f32 %v729_v27, %v1921_v12 }
 0x55b   : > { %v1660_v30 = vpop.eup %1659  ;;  %v737_v31 = vadd.f32 1e-05, %v734_v28 }
 0x55c   : > { %v740_v32 = vmul.f32 %v1660_v30, %v736_v26  ;;  %vm746_vm13 = vweird.f32 %v1660_v30 }
 0x55d   : > { %1661 = vrsqrt.f32 %v737_v31  ;;  %vm747_vm15 = vmor %vm745_vm14, %vm746_vm13  ;;  %vm755_vm2 = vweird.f32 %v737_v31 }
 0x55e   : > { %v741_v33 = vmul.f32 %v1660_v30, %v740_v32 }
 0x560   : > { %v742_v34 = vmul.f32 0.5, %v741_v33  ;;  %v732_v35 = vpop.xlane.xlu1 %731 }
 0x561   : > { %v735_v36 = vmul.f32 %v732_v35, %v1921_v12 }
 0x562   : > { %v743_v38 = vsub.f32 1.5, %v742_v34 }
 0x563   : > { %v1662_v39 = vpop.eup %1661  ;;  %v738_v40 = vadd.f32 1e-05, %v735_v36 }
 0x564   : > { %v744_v41 = vmul.f32 %v1660_v30, %v743_v38  ;;  %v750_v42 = vmul.f32 %v1662_v39, %v737_v31  ;;  %vm756_vm1 = vweird.f32 %v1662_v39 }
 0x565   : > { %1663 = vrsqrt.f32 %v738_v40  ;;  %vm757_vm3 = vmor %vm755_vm2, %vm756_vm1  ;;  %vm765_vm5 = vweird.f32 %v738_v40 }
 0x566   : > { %v748_v43 = vsel %vm747_vm15, %v1660_v30, %v744_v41  ;;  %v751_v44 = vmul.f32 %v1662_v39, %v750_v42 }
 0x567   : > { %v769_v46 = vmul.f32 %v748_v43, %v718_v63 }
 0x568   : > { %v752_v47 = vmul.f32 0.5, %v751_v44 }
 0x569   : > { %1483 = vmatmul.msk.f32.vlgmr.msra.gmra.mxu3 %vm266_vm0, %v769_v46 }
 0x56a   : > { %v753_v50 = vsub.f32 1.5, %v752_v47 }
 0x56b   : > { %v1664_v53 = vpop.eup %1663 }
 0x56c   : > { %v760_v4 = vmul.f32 %v1664_v53, %v738_v40  ;;  %v754_v54 = vmul.f32 %v1662_v39, %v753_v50  ;;  %vm766_vm4 = vweird.f32 %v1664_v53 }
 0x56d   : > { %vm767_vm6 = vmor %vm765_vm5, %vm766_vm4 }
 0x56e   : > { %v761_v55 = vmul.f32 %v1664_v53, %v760_v4  ;;  %v758_v57 = vsel %vm757_vm3, %v1662_v39, %v754_v54 }
 0x56f   : > { %v770_v1 = vmul.f32 %v758_v57, %v2069_v8 }
 0x570   : > { %v762_v58 = vmul.f32 0.5, %v761_v55 }
 0x571   : > { %1484 = vmatmul.msk.f32.gmra.mxu3 %vm266_vm0, %v770_v1  ;;  %v1005_v7 = vpop.permute.xlu2 %1004 }
 0x572   : > { %v763_v59 = vsub.f32 1.5, %v762_v58  ;;  %1502 = vmatpush.xpose.msk.msrb.mxu3 %vm385_vm11, %v1005_v7 }
 0x574   : > { %v764_v61 = vmul.f32 %v1664_v53, %v763_v59 }
 0x576   : > { %v768_v62 = vsel %vm767_vm6, %v1664_v53, %v764_v61 }
 0x577   : > { %v771_v63 = vmul.f32 %v768_v62, %v2078_v15 }
 0x579   : > { %1485 = vmatmul.msk.f32.gmra.mxu3 %vm266_vm0, %v771_v63  ;;  %v1001_v13 = vpop.permute.xlu1 %1000  ;;  %v997_v17 = vpop.permute.xlu2 %996 }
 0x581   : > { %v1003_v8 = vpop.permute.xlu0 %1002 }
 0x582   : > { %1503 = vmatpush.xpose.msk.msrb.mxu3 %vm385_vm11, %v1003_v8 }
 0x586   : > { %1504 = vmatpush.xpose.msk.msrb.mxu3 %vm385_vm11, %v1001_v13 }
 0x589   : > { %v999_v14 = vpop.permute.xlu0 %998 }
 0x58a   : > { %1505 = vmatpush.xpose.msk.msrb.mxu3 %vm385_vm11, %v999_v14 }
 0x58e   : > { %1506 = vmatpush.xpose.msk.msrb.mxu3 %vm385_vm11, %v997_v17 }
 0x5ec   : > { %v799_v10 = vpop.f32.mrf.mxu3 }
 0x5ed   : > { %v800_v11 = vadd.f32 %v1623_v9, %v799_v10 }
 0x5ef   : > { %1496 = vmatmul.msk.f32.vlgmr.msrb.gmra.mxu0 %vm385_vm11, %v800_v11  ;;  %990 = vrot.lane.b32.xlu1 %v800_v11, %s1798_s25 }
 0x5f4   : > { %v802_v15 = vpop.f32.mrf.mxu3 }
 0x5f5   : > { %v803_v16 = vadd.f32 %v1623_v9, %v802_v15 }
 0x5f7   : > { %992 = vrot.lane.b32.xlu0 %v803_v16, %s1798_s25  ;;  %1497 = vmatmul.msk.f32.gmra.mxu0 %vm385_vm11, %v803_v16 }
 0x5fc   : > { %v805_v18 = vpop.f32.mrf.mxu3 }
 0x5fd   : > { %v806_v19 = vadd.f32 %v1623_v9, %v805_v18 }
 0x5ff   : > { %1601 = vrot.lane.b32.xlu0 %v1600_v20, %s1796_s20  ;;  %994 = vrot.lane.b32.xlu2 %v806_v19, %s1798_s25 }
 0x600   : > { %1498 = vmatmul.msk.f32.gmra.mxu0 %vm385_vm11, %v806_v19 }
 0x607   : > { %1606 = vrot.lane.b32.xlu0 %v1605_v21, %s1796_s20 }
 0x659   : > { %v995_v26 = vpop.permute.xlu2 %994 }
 0x661   : > { %v991_v22 = vpop.permute.xlu1 %990 }
 0x662   : > { %1507 = vmatmul.msk.f32.vlgmr.msrb.gmra.mxu3 %vm385_vm11, %v991_v22  ;;  %v230_v22 = vld [vmem:[%s2332_s2 + $0x98] sm:$0xff] }
 0x669   : > { %v993_v23 = vpop.permute.xlu0 %992 }
 0x66a   : > { %1508 = vmatmul.msk.f32.gmra.mxu3 %vm385_vm11, %v993_v23  ;;  %v227_v23 = vld [vmem:[%s2332_s2 + $0x80] sm:$0xff] }
 0x66c   : > { %v897_v24 = vpop.f32.mrf.mxu0 }
 0x66d   : > { %v907_v25 = vsel %vm906_vm7, %v897_v24, -inf }
 0x66e   : > { %908 = vmax.xlane.f32.xlu1 %v907_v25 }
 0x671   : > { %v1602_v27 = vpop.permute.xlu0 %1601 }
 0x672   : > { %v1603_v28 = vunpack.i.l.bf16 %v1602_v27  ;;  %1509 = vmatmul.msk.f32.gmra.mxu3 %vm385_vm11, %v995_v26  ;;  %v1604_v29 = vunpack.i.h.bf16 %v1602_v27 }
 0x674   : > { %v900_v30 = vpop.f32.mrf.mxu0  ;;  %972 = vmatpush.msrb.mxu1 %v1603_v28 }
 0x675   : > { %v910_v31 = vsel %vm906_vm7, %v900_v30, -inf }
 0x676   : > { %973 = vmatpush.msrb.mxu1 %v1604_v29  ;;  %911 = vmax.xlane.f32.xlu0 %v910_v31 }
 0x679   : > { %v1607_v32 = vpop.permute.xlu0 %1606 }
 0x67a   : > { %v1608_v33 = vunpack.i.l.bf16 %v1607_v32  ;;  %v1609_v34 = vunpack.i.h.bf16 %v1607_v32 }
 0x67c   : > { %974 = vmatpush.msrb.mxu1 %v1608_v33 }
 0x67d   : > { %v903_v4 = vpop.f32.mrf.mxu0 }
 0x67e   : > { %975 = vmatpush.msrb.mxu1 %v1609_v34  ;;  %v913_v55 = vsel %vm906_vm7, %v903_v4, -inf }
 0x687   : > { %1611 = vrot.lane.b32.xlu1 %v1600_v20, %s1797_s26 }
 0x68a   : > { %1616 = vrot.lane.b32.xlu0 %v1605_v21, %s1797_s26  ;;  %v228_v21 = vld [vmem:[%s2332_s2 + $0x88] sm:$0xff] }
 0x68b   : > { %1189 = vmatpush.msra.mxu3 %v228_v21  ;;  %v233_v21 = vld [vmem:[%s2332_s2 + $0xb0] sm:$0xff] }
 0x68d   : > { %1190 = vmatpush.msra.mxu3 %v227_v23  ;;  %v231_v23 = vld [vmem:[%s2332_s2 + $0xa0] sm:$0xff] }
 0x692   : > { %1078 = vrot.lane.b32.xlu0 %v2115_v6, %s1797_s26 }
 0x6e1   : > { %v909_v39 = vpop.xlane.xlu1 %908 }
 0x6e2   : > { %v916_v52 = vsub.f32 %v897_v24, %v909_v39  ;;  %v229_v24 = vld [vmem:[%s2332_s2 + $0x90] sm:$0xff] }
 0x6e4   : > { %v919_v53 = vmul.f32 1.442695, %v916_v52 }
 0x6e5   : > { %v1039_v35 = vpop.f32.mrf.mxu3 }
 0x6e6   : > { %v1048_v36 = vsel %vm906_vm7, %v1039_v35, -inf  ;;  %1665 = vpow2.f32 %v919_v53 }
 0x6e7   : > { %1049 = vmax.xlane.f32.xlu2 %v1048_v36 }
 0x6e9   : > { %v912_v40 = vpop.xlane.xlu0 %911 }
 0x6ea   : > { %v917_v54 = vsub.f32 %v900_v30, %v912_v40 }
 0x6ec   : > { %v921_v57 = vmul.f32 1.442695, %v917_v54  ;;  %v1666_v1 = vpop.eup %1665 }
 0x6ed   : > { %v1042_v37 = vpop.f32.mrf.mxu3  ;;  %v925_v58 = vsel %vm906_vm7, %v1666_v1, 0.0 }
 0x6ee   : > { %v1051_v38 = vsel %vm906_vm7, %v1042_v37, -inf  ;;  %1667 = vpow2.f32 %v921_v57 }
 0x6ef   : > { %1052 = vmax.xlane.f32.xlu1 %v1051_v38 }
 0x6f4   : > { %v1668_v0 = vpop.eup %1667 }
 0x6f5   : > { %v1045_v41 = vpop.f32.mrf.mxu3  ;;  %v928_v59 = vsel %vm906_vm7, %v1668_v0, 0.0 }
 0x6f6   : > { %v1054_v42 = vsel %vm906_vm7, %v1045_v41, -inf }
 0x6f7   : > { %1055 = vmax.xlane.f32.xlu0 %v1054_v42 }
 0x6f9   : > { %v1612_v43 = vpop.permute.xlu1 %1611 }
 0x6fa   : > { %v1613_v44 = vunpack.i.l.bf16 %v1612_v43  ;;  %v1614_v46 = vunpack.i.h.bf16 %v1612_v43 }
 0x6fc   : > { %v1617_v47 = vpop.permute.xlu0 %1616  ;;  %1113 = vmatpush.msra.mxu0 %v1613_v44 }
 0x6fd   : > { %v1618_v48 = vunpack.i.l.bf16 %v1617_v47  ;;  %v1619_v49 = vunpack.i.h.bf16 %v1617_v47 }
 0x6fe   : > { %1114 = vmatpush.msra.mxu0 %v1614_v46 }
 0x6ff   : > { %937 = vrot.lane.b32.xlu2 %v2115_v6, %s1796_s20  ;;  %s1745_s20 = scalar_lea.hbm %s2333_s3, 48 }
 0x700   : > { %1115 = vmatpush.msra.mxu0 %v1618_v48  ;;  %p1747_p5 = scmp.lt.s32.totalorder %s1745_s20, %s1741_s10 }
 0x702   : > { %1116 = vmatpush.msra.mxu0 %v1619_v49  ;;  %p1748_p7 = por %p1747_p5, %p1746_p4 }
 0x704   : > { %v1079_v50 = vpop.permute.xlu0 %1078  ;;  %p1749_p8 = pnand %p1748_p7, %p1744_p3 }
 0x705   : > { %1117 = vmatpush.msra.mxu0 %v1079_v50 }
 0x728   : > { %914 = vmax.xlane.f32.xlu2 %v913_v55 }
 0x730   : > { %926 = vadd.xlane.f32.xlu2 %v925_v58 }
 0x738   : > { %929 = vadd.xlane.f32.xlu2 %v928_v59 }
 0x75a   : > { %v1050_v60 = vpop.xlane.xlu2 %1049 }
 0x75b   : > { %v1057_v61 = vsub.f32 %v1039_v35, %v1050_v60 }
 0x75d   : > { %v1060_v62 = vmul.f32 1.442695, %v1057_v61 }
 0x75f   : > { %1669 = vpow2.f32 %v1060_v62 }
 0x762   : > { %v938_v63 = vpop.permute.xlu2 %937  ;;  %v1053_v2 = vpop.xlane.xlu1 %1052 }
 0x763   : > { %v1058_v3 = vsub.f32 %v1042_v37, %v1053_v2  ;;  %976 = vmatpush.msrb.mxu1 %v938_v63 }
 0x764   : > { %1499 = vmatmul.msk.f32.vlgmr.msrb.gmra.mxu1 %vm906_vm7, %v1666_v1 }
 0x765   : > { %v1670_v5 = vpop.eup %1669  ;;  %v1062_v6 = vmul.f32 1.442695, %v1058_v3  ;;  %1154 = vmatpush.msra.mxu1 %v230_v22  ;;  %v232_v22 = vld [vmem:[%s2332_s2 + $0xa8] sm:$0xff] }
 0x766   : > { %1510 = vmatmul.msk.f32.vlgmr.msra.gmra.mxu0 %vm906_vm7, %v1670_v5  ;;  %v1066_v7 = vsel %vm906_vm7, %v1670_v5, 0.0 }
 0x767   : > { %1671 = vpow2.f32 %v1062_v6  ;;  %1067 = vadd.xlane.f32.xlu1 %v1066_v7  ;;  %1155 = vmatpush.msra.mxu1 %v229_v24 }
 0x76a   : > { %v1056_v8 = vpop.xlane.xlu0 %1055 }
 0x76b   : > { %v1059_v9 = vsub.f32 %v1045_v41, %v1056_v8 }
 0x76c   : > { %1500 = vmatmul.msk.f32.gmra.mxu1 %vm906_vm7, %v1668_v0 }
 0x76d   : > { %v1672_v10 = vpop.eup %1671  ;;  %v1064_v11 = vmul.f32 1.442695, %v1059_v9 }
 0x76e   : > { %1511 = vmatmul.msk.f32.gmra.mxu0 %vm906_vm7, %v1672_v10  ;;  %v1069_v13 = vsel %vm906_vm7, %v1672_v10, 0.0 }
 0x76f   : > { %1673 = vpow2.f32 %v1064_v11  ;;  %1070 = vadd.xlane.f32.xlu1 %v1069_v13 }
 0x775   : > { %v1674_v14 = vpop.eup %1673 }
 0x776   : > { %1512 = vmatmul.msk.f32.gmra.mxu0 %vm906_vm7, %v1674_v14  ;;  %v1072_v15 = vsel %vm906_vm7, %v1674_v14, 0.0 }
 0x777   : > { %1073 = vadd.xlane.f32.xlu1 %v1072_v15 }
 0x79b   : > { %v915_v16 = vpop.xlane.xlu2 %914 }
 0x79c   : > { %v918_v17 = vsub.f32 %v903_v4, %v915_v16  ;;  %v1624_v4 = vld [vmem:[%s2332_s2 + $0x144] ss:$0 sm:$0xff] }
 0x79e   : > { %v923_v18 = vmul.f32 1.442695, %v918_v17 }
 0x7a0   : > { %1675 = vpow2.f32 %v923_v18 }
 0x7a3   : > { %v927_v25 = vpop.xlane.xlu2 %926 }
 0x7a4   : > { %1677 = vrcp.f32 %v927_v25 }
 0x7a6   : > { %v1676_v19 = vpop.eup %1675 }
 0x7a7   : > { %1501 = vmatmul.msk.f32.gmra.mxu1 %vm906_vm7, %v1676_v19  ;;  %v931_v20 = vsel %vm906_vm7, %v1676_v19, 0.0 }
 0x7a8   : > { %932 = vadd.xlane.f32.xlu2 %v931_v20  ;;  %v234_v20 = vld [vmem:[%s2332_s2 + $0xb8] sm:$0xff] }
 0x7a9   : > { %1296 = vmatpush.msrb.mxu2 %v234_v20 }
 0x7aa   : > { %v1678_v28 = vpop.eup %1677 }
 0x7ab   : > { %v930_v27 = vpop.xlane.xlu2 %929  ;;  %1297 = vmatpush.msrb.mxu2 %v233_v21 }
 0x7ad   : > { %1298 = vmatpush.msrb.mxu2 %v232_v22  ;;  %v1626_v22 = vld [vmem:[%s2332_s2 + $0x146] ss:$0 sm:$0xff] }
 0x7af   : > { %1299 = vmatpush.msrb.mxu2 %v231_v23 }
 0x7da   : > { %v1068_v26 = vpop.xlane.xlu1 %1067 }
 0x7db   : > { %1679 = vrcp.f32 %v1068_v26 }
 0x7dc   : > { %1681 = vrcp.f32 %v930_v27 }
 0x7e1   : > { %v978_v29 = vpop.f32.mrf.mxu1  ;;  %v1680_v32 = vpop.eup %1679 }
 0x7e2   : > { %v987_v30 = vmul.f32 %v1678_v28, %v978_v29  ;;  %v1071_v31 = vpop.xlane.xlu1 %1070  ;;  %v1682_v35 = vpop.eup %1681 }
 0x7e3   : > { %v1119_v33 = vpop.f32.mrf.mxu0  ;;  %1683 = vrcp.f32 %v1071_v31 }
 0x7e4   : > { %v1128_v34 = vmul.f32 %v1680_v32, %v1119_v33  ;;  %1516 = vmatmul.msk.f32.vlgmr.msra.gmra.mxu3 %vm385_vm11, %v987_v30 }
 0x7e6   : > { %1513 = vmatmul.msk.f32.vlgmr.msra.gmra.mxu1 %vm385_vm11, %v1128_v34 }
 0x7e9   : > { %v981_v36 = vpop.f32.mrf.mxu1  ;;  %v1684_v39 = vpop.eup %1683 }
 0x7ea   : > { %v988_v37 = vmul.f32 %v1682_v35, %v981_v36  ;;  %v1074_v38 = vpop.xlane.xlu1 %1073 }
 0x7eb   : > { %v1122_v40 = vpop.f32.mrf.mxu0  ;;  %1685 = vrcp.f32 %v1074_v38 }
 0x7ec   : > { %v1129_v41 = vmul.f32 %v1684_v39, %v1122_v40  ;;  %1517 = vmatmul.msk.f32.gmra.mxu3 %vm385_vm11, %v988_v37 }
 0x7ee   : > { %1514 = vmatmul.msk.f32.gmra.mxu1 %vm385_vm11, %v1129_v41 }
 0x7f1   : > { %v1686_v42 = vpop.eup %1685 }
 0x7f3   : > { %v1125_v43 = vpop.f32.mrf.mxu0 }
 0x7f4   : > { %v1130_v44 = vmul.f32 %v1686_v42, %v1125_v43 }
 0x7f6   : > { %1515 = vmatmul.msk.f32.gmra.mxu1 %vm385_vm11, %v1130_v44 }
 0x81b   : > { %v933_v46 = vpop.xlane.xlu2 %932 }
 0x81c   : > { %1687 = vrcp.f32 %v933_v46 }
 0x822   : > { %v1688_v47 = vpop.eup %1687 }
 0x824   : > { %v984_v48 = vpop.f32.mrf.mxu1 }
 0x825   : > { %v989_v49 = vmul.f32 %v1688_v47, %v984_v48  ;;  %v250_v47 = vld [vmem:[%s2332_s2 + $0x138] sm:$0xff]  ;;  %v249_v48 = vld [vmem:[%s2332_s2 + $0x130] sm:$0xff] }
 0x826   : > { %1313 = vmatpush.msrb.mxu0 %v250_v47 }
 0x827   : > { %1518 = vmatmul.msk.f32.gmra.mxu3 %vm385_vm11, %v989_v49  ;;  %v248_v49 = vld [vmem:[%s2332_s2 + $0x128] sm:$0xff] }
 0x828   : > { %1314 = vmatpush.msrb.mxu0 %v249_v48 }
 0x82a   : > { %1315 = vmatpush.msrb.mxu0 %v248_v49 }
 0x863   : > { %v1157_v50 = vpop.f32.mrf.mxu1 }
 0x867   : > { %v1192_v52 = vpop.f32.mrf.mxu3 }
 0x868   : > { %v1193_v53 = vadd.f32 %v1192_v52, %v1157_v50  ;;  %v247_v50 = vld [vmem:[%s2332_s2 + $0x120] sm:$0xff]  ;;  %v246_v52 = vld [vmem:[%s2332_s2 + $0x118] sm:$0xff] }
 0x869   : > { %1316 = vmatpush.msrb.mxu0 %v247_v50 }
 0x86a   : > { %v1201_v54 = vadd.f32 %v1193_v53, %v2027_v45 }
 0x86b   : > { %v1160_v1 = vpop.f32.mrf.mxu1  ;;  %1317 = vmatpush.msrb.mxu0 %v246_v52 }
 0x86c   : > { %v2189_v55 = vadd.f32 %v1624_v4, %v1201_v54  ;;  %v245_v54 = vld [vmem:[%s2332_s2 + $0x110] sm:$0xff] }
 0x86d   : > { %1318 = vmatpush.msrb.mxu0 %v245_v54 }
 0x86e   : > { %v1208_v57 = vsel %vm266_vm0, %v2189_v55, 0.0 }
 0x86f   : > { %v1195_v58 = vpop.f32.mrf.mxu3  ;;  %1209 = vadd.xlane.f32.xlu0 %v1208_v57 }
 0x870   : > { %v1196_v0 = vadd.f32 %v1195_v58, %v1160_v1  ;;  %v244_v1 = vld [vmem:[%s2332_s2 + $0x108] sm:$0xff]  ;;  %v243_v58 = vld [vmem:[%s2332_s2 + $0x100] sm:$0xff] }
 0x871   : > { %1319 = vmatpush.msrb.mxu0 %v244_v1 }
 0x872   : > { %v1202_v59 = vadd.f32 %v1196_v0, %v2032_v51  ;;  %v241_v0 = vld [vmem:[%s2332_s2 + $0xf0] sm:$0xff] }
 0x873   : > { %v1163_v62 = vpop.f32.mrf.mxu1  ;;  %1320 = vmatpush.msrb.mxu0 %v243_v58 }
 0x874   : > { %v2194_v60 = vadd.f32 %v1624_v4, %v1202_v59 }
 0x876   : > { %v1211_v61 = vsel %vm266_vm0, %v2194_v60, 0.0 }
 0x877   : > { %1212 = vadd.xlane.f32.xlu2 %v1211_v61  ;;  %v240_v61 = vld [vmem:[%s2332_s2 + $0xe8] sm:$0xff] }
 0x8aa   : > { %v1198_v63 = vpop.f32.mrf.mxu3 }
 0x8ab   : > { %v1199_v45 = vadd.f32 %v1198_v63, %v1163_v62  ;;  %v239_v63 = vld [vmem:[%s2332_s2 + $0xe0] sm:$0xff] }
 0x8ad   : > { %v1203_v2 = vadd.f32 %v1199_v45, %v2037_v56 }
 0x8af   : > { %v2199_v3 = vadd.f32 %v1624_v4, %v1203_v2  ;;  %v238_v2 = vld [vmem:[%s2332_s2 + $0xd8] sm:$0xff] }
 0x8b1   : > { %v1214_v5 = vsel %vm266_vm0, %v2199_v3, 0.0 }
 0x8b2   : > { %1215 = vadd.xlane.f32.xlu1 %v1214_v5 }
 0x8e2   : > { %v1210_v6 = vpop.xlane.xlu0 %1209 }
 0x8e3   : > { %v1217_v51 = vmul.f32 %v1210_v6, %v1921_v12 }
 0x8e5   : > { %v1220_v7 = vsub.f32 %v2189_v55, %v1217_v51 }
 0x8e7   : > { %v1223_v8 = vmul.f32 %v1220_v7, %v1220_v7 }
 0x8e9   : > { %v1226_v9 = vsel %vm266_vm0, %v1223_v8, 0.0 }
 0x8ea   : > { %1227 = vadd.xlane.f32.xlu0 %v1226_v9  ;;  %v1213_v10 = vpop.xlane.xlu2 %1212  ;;  %v237_v9 = vld [vmem:[%s2332_s2 + $0xd0] sm:$0xff] }
 0x8eb   : > { %v1218_v11 = vmul.f32 %v1213_v10, %v1921_v12  ;;  %v236_v10 = vld [vmem:[%s2332_s2 + $0xc8] sm:$0xff] }
 0x8ed   : > { %v1221_v56 = vsub.f32 %v2194_v60, %v1218_v11  ;;  %v235_v11 = vld [vmem:[%s2332_s2 + $0xc0] sm:$0xff] }
 0x8ef   : > { %v1224_v13 = vmul.f32 %v1221_v56, %v1221_v56 }
 0x8f1   : > { %v1229_v14 = vsel %vm266_vm0, %v1224_v13, 0.0 }
 0x8f2   : > { %1230 = vadd.xlane.f32.xlu2 %v1229_v14 }
 0x925   : > { %v1216_v15 = vpop.xlane.xlu1 %1215 }
 0x926   : > { %v1219_v16 = vmul.f32 %v1216_v15, %v1921_v12 }
 0x928   : > { %v2211_v17 = vsub.f32 %v2199_v3, %v1219_v16 }
 0x92a   : > { %v1225_v18 = vmul.f32 %v2211_v17, %v2211_v17 }
 0x92c   : > { %v1232_v19 = vsel %vm266_vm0, %v1225_v18, 0.0 }
 0x92d   : > { %1233 = vadd.xlane.f32.xlu1 %v1232_v19 }
 0x95d   : > { %v1228_v24 = vpop.xlane.xlu0 %1227 }
 0x95e   : > { %v1235_v25 = vmul.f32 %v1228_v24, %v1921_v12 }
 0x960   : > { %v1238_v26 = vadd.f32 1e-05, %v1235_v25 }
 0x962   : > { %1689 = vrsqrt.f32 %v1238_v26  ;;  %vm1247_vm9 = vweird.f32 %v1238_v26 }
 0x965   : > { %v1231_v27 = vpop.xlane.xlu2 %1230 }
 0x966   : > { %v1236_v28 = vmul.f32 %v1231_v27, %v1921_v12 }
 0x968   : > { %v1690_v29 = vpop.eup %1689  ;;  %v1239_v30 = vadd.f32 1e-05, %v1236_v28 }
 0x969   : > { %v1242_v31 = vmul.f32 %v1690_v29, %v1238_v26  ;;  %vm1248_vm8 = vweird.f32 %v1690_v29 }
 0x96a   : > { %1691 = vrsqrt.f32 %v1239_v30  ;;  %vm1249_vm10 = vmor %vm1247_vm9, %vm1248_vm8  ;;  %vm1257_vm12 = vweird.f32 %v1239_v30 }
 0x96b   : > { %v1243_v32 = vmul.f32 %v1690_v29, %v1242_v31 }
 0x96d   : > { %v1244_v33 = vmul.f32 0.5, %v1243_v32 }
 0x96f   : > { %v1245_v34 = vsub.f32 1.5, %v1244_v33 }
 0x970   : > { %v1692_v35 = vpop.eup %1691 }
 0x971   : > { %v1246_v36 = vmul.f32 %v1690_v29, %v1245_v34  ;;  %v1252_v37 = vmul.f32 %v1692_v35, %v1239_v30  ;;  %vm1258_vm11 = vweird.f32 %v1692_v35 }
 0x972   : > { %vm1259_vm13 = vmor %vm1257_vm12, %vm1258_vm11 }
 0x973   : > { %v1250_v38 = vsel %vm1249_vm10, %v1690_v29, %v1246_v36  ;;  %v1253_v39 = vmul.f32 %v1692_v35, %v1252_v37 }
 0x974   : > { %v1271_v40 = vmul.f32 %v1250_v38, %v1220_v7 }
 0x975   : > { %v1254_v41 = vmul.f32 0.5, %v1253_v39 }
 0x976   : > { %1519 = vmatmul.msk.f32.vlgmr.msrb.gmra.mxu2 %vm266_vm0, %v1271_v40 }
 0x977   : > { %v1255_v42 = vsub.f32 1.5, %v1254_v41 }
 0x979   : > { %v1256_v43 = vmul.f32 %v1692_v35, %v1255_v42 }
 0x97b   : > { %v1260_v44 = vsel %vm1259_vm13, %v1692_v35, %v1256_v43 }
 0x97c   : > { %v1272_v46 = vmul.f32 %v1260_v44, %v1221_v56  ;;  %v1625_v56 = vld [vmem:[%s2332_s2 + $0x145] ss:$0 sm:$0xff] }
 0x97e   : > { %1520 = vmatmul.msk.f32.gmra.mxu2 %vm266_vm0, %v1272_v46 }
 0x9a0   : > { %v1234_v53 = vpop.xlane.xlu1 %1233 }
 0x9a1   : > { %v1237_v4 = vmul.f32 %v1234_v53, %v1921_v12  ;;  %v242_v12 = vld [vmem:[%s2332_s2 + $0xf8] sm:$0xff] }
 0x9a2   : > { %1321 = vmatpush.msrb.mxu0 %v242_v12 }
 0x9a3   : > { %v1240_v57 = vadd.f32 1e-05, %v1237_v4 }
 0x9a4   : > { %1322 = vmatpush.msrb.mxu0 %v241_v0 }
 0x9a5   : > { %1693 = vrsqrt.f32 %v1240_v57  ;;  %vm1267_vm15 = vweird.f32 %v1240_v57 }
 0x9a6   : > { %1323 = vmatpush.msrb.mxu0 %v240_v61 }
 0x9a8   : > { %1324 = vmatpush.msrb.mxu0 %v239_v63 }
 0x9aa   : > { %1325 = vmatpush.msrb.mxu0 %v238_v2 }
 0x9ab   : > { %v1694_v59 = vpop.eup %1693 }
 0x9ac   : > { %v1262_v62 = vmul.f32 %v1694_v59, %v1240_v57  ;;  %vm1268_vm14 = vweird.f32 %v1694_v59  ;;  %1326 = vmatpush.msrb.mxu0 %v237_v9 }
 0x9ad   : > { %vm1269_vm1 = vmor %vm1267_vm15, %vm1268_vm14 }
 0x9ae   : > { %v1263_v45 = vmul.f32 %v1694_v59, %v1262_v62  ;;  %1327 = vmatpush.msrb.mxu0 %v236_v10 }
 0x9b0   : > { %v1264_v5 = vmul.f32 0.5, %v1263_v45  ;;  %1328 = vmatpush.msrb.mxu0 %v235_v11 }
 0x9b2   : > { %v1265_v6 = vsub.f32 1.5, %v1264_v5 }
 0x9b4   : > { %v1266_v51 = vmul.f32 %v1694_v59, %v1265_v6 }
 0x9b6   : > { %v1270_v7 = vsel %vm1269_vm1, %v1694_v59, %v1266_v51 }
 0x9b7   : > { %v1273_v8 = vmul.f32 %v1270_v7, %v2211_v17 }
 0x9b9   : > { %1521 = vmatmul.msk.f32.gmra.mxu2 %vm266_vm0, %v1273_v8 }
 0x9f9   : > { %v1301_v13 = vpop.f32.mrf.mxu2 }
 0x9fa   : > { %v1302_v14 = vadd.f32 %v1625_v56, %v1301_v13 }
 0x9fc   : > { %v1310_v15 = vmax.f32 %v1302_v14, 0.0 }
 0x9fe   : > { %1329 = vmatmul.f32.vlgmr.msrb.gmra.mxu0 %v1310_v15 }
 0xa01   : > { %v1304_v16 = vpop.f32.mrf.mxu2 }
 0xa02   : > { %v1305_v17 = vadd.f32 %v1625_v56, %v1304_v16 }
 0xa04   : > { %v1311_v18 = vmax.f32 %v1305_v17, 0.0 }
 0xa06   : > { %1332 = vmatmul.f32.gmra.mxu0 %v1311_v18 }
 0xa3c   : > { %v1307_v19 = vpop.f32.mrf.mxu2 }
 0xa3d   : > { %v1308_v20 = vadd.f32 %v1625_v56, %v1307_v19 }
 0xa3f   : > { %v1312_v21 = vmax.f32 %v1308_v20, 0.0 }
 0xa41   : > { %1335 = vmatmul.f32.gmra.mxu0 %v1312_v21 }
 0xa7b   : > { %v1330_v23 = vpop.f32.mrf.mxu0 }
 0xa7c   : > { %v1339_v24 = vadd.f32 %v1330_v23, %v2189_v55 }
 0xa7e   : > { %v1343_v25 = vadd.f32 %v1626_v22, %v1339_v24 }
 0xa80   : > { %1346 = vst.msk [vmem:[%s205_s30] sm:$0xff] %vm266_vm0, %v1343_v25 }
 0xa83   : > { %v1333_v26 = vpop.f32.mrf.mxu0 }
 0xa84   : > { %v1340_v27 = vadd.f32 %v1333_v26, %v2194_v60 }
 0xa86   : > { %v1344_v28 = vadd.f32 %v1626_v22, %v1340_v27 }
 0xa88   : > { %1347 = vst.msk [vmem:[%s205_s30 + $0x8] sm:$0xff] %vm266_vm0, %v1344_v28 }
 0xabe   : > { %v1336_v55 = vpop.f32.mrf.mxu0 }
 0xabf   : > { %v1341_v29 = vadd.f32 %v1336_v55, %v2199_v3 }
 0xac1   : > { %v1345_v30 = vadd.f32 %v1626_v22, %v1341_v29 }
 0xac3   : > { %1348 = vst.msk [vmem:[%s205_s30 + $0x10] sm:$0xff] %vm266_vm0, %v1345_v30 }
 0xac4   : > { %1752 = shalt.err (!%p1749_p8)
}
 0xac5   : > { %s1801_s28 = smov 128   ;;  %s1802_s17 = smov 8  }
 0xac6   : > { %1536 = dma.vmem_to_hbm [thread:$0]  (%p1869_p11), %s1363_s7, 384, %s1365_s8, %s1350_s29, %s1801_s28, %s1801_s28, %s1802_s17  }
 0xac7 PF: > { %s1379_s19 = sand.u32 1, %s1779_s12   ;;  %p1543_p10 = pnand %p1452_p9, %p1873_p12 }
 0xac8   : > { %s1380_s27 = scalar_lea.sflag [#allocation4], %s1379_s19 }
 0xac9   : > { %p1544_p0 = pneg %p1543_p10 }
 0xacb   : > { %1774 = dma.done.wait (%p1544_p0), %s1380_s27, 384  }
 0xacc   : > { %1776 = vsyncadd (%p1544_p0), %s1380_s27, 4294966912  ;;  %p16_p1 = scmp.ge.s32.totalorder %s1848_s18, 4   ;;  %s2338_s12 = smov %s1783_s13 }
 0xacd   : > { %s2339_s13 = smov %s1787_s14  ;;  %s2340_s14 = smov %s1860_s21 }
 0xace   : > { %s2341_s15 = smov %s1848_s18  ;;  %18 = sbr.rel (!%p16_p1) target bundleno = 5 (0x5), region = 80 }
 0xad3   :  { %1386 = vsyncpa [#allocation3], 1 }
 0xad4   :  { %1388 = vsyncpa [#allocation3 + $0x1], 1 }
 0xad5   :  { %1389 = vsyncpa [#allocation4], 1 }
 0xad6   :  { %1391 = vsyncpa [#allocation4 + $0x1], 1 }

</bundles_post_ra>
